<compile_context>
chip_gen: v6e
topology: v6e:2x2x1
jax: 0.10.0
libtpu: 0.0.40
codegen_flags: <defaults>
</compile_context>

<pallas_src>
import math
import functools

import jax
import jax.numpy as jnp
import numpy as np
from jax.experimental import pallas as pl
from jax.experimental.pallas import tpu as pltpu

MXU_DTYPE = jnp.bfloat16          # feed the MXU bf16 operands, accumulate in f32


# ----------------------------------------------------------------- tiling ---

def _choose_tile(dim, pref, align):
    """Largest tile <= pref that divides dim and is a multiple of `align`.
    Falls back to the full dimension (allowed by the 'equal full dim' rule)."""
    if dim <= pref:
        return dim
    for t in range(pref, 0, -1):
        if dim % t == 0 and t % align == 0:
            return t
    # TODO(synk): for large non-divisible dims prefer a padded pl.cdiv grid instead
    # of one full-dim block.
    return dim


def _default_vmem_limit():
    try:
        cap = int(pltpu.get_tpu_info().vmem_capacity_bytes)
        if cap >= 128 * 1024 * 1024:           # v5e / v6e: 128 MiB per TensorCore
            return 96 * 1024 * 1024
    except Exception:
        pass
    return 48 * 1024 * 1024                     # v7x-safe (64 MiB per TensorCore)


_VMEM_LIMIT = _default_vmem_limit()


# ------------------------------------------------------------------ matmul --

def _matmul_kernel(x_ref, w_ref, b_ref, o_ref, acc_ref, *, activation):
    """Tiled y = act(x @ w + b); grid = (M/tm, N/tn, K/tk), K is the reduction axis."""
    @pl.when(pl.program_id(2) == 0)
    def _init():
        acc_ref[...] = jnp.zeros_like(acc_ref)

    acc_ref[...] += jnp.dot(x_ref[...], w_ref[...],
                            preferred_element_type=jnp.float32)

    @pl.when(pl.program_id(2) == pl.num_programs(2) - 1)
    def _finalize():
        y = acc_ref[...] + b_ref[...]
        if activation == "relu":
            y = jnp.maximum(y, 0.0)
        o_ref[...] = y.astype(o_ref.dtype)


def pallas_matmul(x, w, b=None, activation=None, *, tm=256, tn=256, tk=512):
    """y = act(x @ w + b); bf16 MXU operands, fp32 accumulation, fp32 output."""
    M, K = x.shape
    N = w.shape[1]
    x = x.astype(MXU_DTYPE)
    w = w.astype(MXU_DTYPE)
    tm = _choose_tile(M, tm, 16)      # bf16 sublane packing -> 16-row alignment
    tn = _choose_tile(N, tn, 128)
    tk = _choose_tile(K, tk, 128)
    if b is None:
        b = jnp.zeros((N,), jnp.float32)
    kernel = functools.partial(_matmul_kernel, activation=activation)
    return pl.pallas_call(
        kernel,
        out_shape=jax.ShapeDtypeStruct((M, N), jnp.float32),
        grid=(M // tm, N // tn, K // tk),
        in_specs=[
            pl.BlockSpec((tm, tk), lambda i, j, k: (i, k)),
            pl.BlockSpec((tk, tn), lambda i, j, k: (k, j)),
            pl.BlockSpec((1, tn), lambda i, j, k: (0, j)),
        ],
        out_specs=pl.BlockSpec((tm, tn), lambda i, j, k: (i, j)),
        scratch_shapes=[pltpu.VMEM((tm, tn), jnp.float32)],
        compiler_params=pltpu.CompilerParams(
            dimension_semantics=("parallel", "parallel", "arbitrary"),
            vmem_limit_bytes=_VMEM_LIMIT),
    )(x, w, b.astype(jnp.float32).reshape(1, N))


# --------------------------------------------------------------- attention --

def _hgt_attn_kernel(q_ref, kt_ref, vp_ref, mask_ref, valid_ref, seg_ref, hm_ref,
                     o_ref, m_sc, l_sc, acc_sc, *, heads):
    """Flash-style masked multi-head attention with head-packed K/V.

    q:(tq,HD) bf16            kt:(HD, H*tns) bf16  (column g = j*H*tns + h*tns + t)
    vp:(H*tns,HD) bf16        mask:(tq,tns) int8   valid:(tq,1) f32
    seg:(H*tns,H) bf16 one-hot head segments       hm:(H,HD) f32 one-hot head lanes
    Online softmax over the KV grid axis with a shared (cross-head) running max,
    per-head denominators via one segment matmul.
    """
    j = pl.program_id(1)

    @pl.when(j == 0)
    def _init():
        m_sc[...] = jnp.full(m_sc.shape, -1e30, jnp.float32)
        l_sc[...] = jnp.zeros_like(l_sc)
        acc_sc[...] = jnp.zeros_like(acc_sc)

    q = q_ref[...]                                           # (tq, HD) bf16
    kt = kt_ref[...]                                         # (HD, H*tns) bf16
    s = jnp.dot(q, kt, preferred_element_type=jnp.float32)   # (tq, H*tns) f32

    # additive mask bias built in-kernel from the int8 mask (0 -> -1e30, 1 -> 0),
    # replicated across the H head blocks of the packed score columns.
    bias = (mask_ref[...].astype(jnp.float32) - 1.0) * 1e30  # (tq, tns)
    s = s + jnp.concatenate([bias] * heads, axis=1)

    m_prev = m_sc[...]
    m_new = jnp.maximum(m_prev, jnp.max(s, axis=-1, keepdims=True))   # (tq, 1)
    alpha = jnp.exp(m_prev - m_new)
    p = jnp.exp(s - m_new).astype(MXU_DTYPE)                 # (tq, H*tns) bf16
    l_sc[...] = alpha * l_sc[...] + jnp.dot(p, seg_ref[...],
                                            preferred_element_type=jnp.float32)
    acc_sc[...] = alpha * acc_sc[...] + jnp.dot(p, vp_ref[...],
                                                preferred_element_type=jnp.float32)
    m_sc[...] = m_new

    @pl.when(j == pl.num_programs(1) - 1)
    def _finalize():
        recip = pl.reciprocal(jnp.maximum(l_sc[...], 1e-30), approx=True)  # (tq, H)
        scale = jnp.dot(recip, hm_ref[...],
                        preferred_element_type=jnp.float32)                # (tq, HD)
        # rows with no incoming edges contribute 0 (scatter-softmax semantics)
        o_ref[...] = (acc_sc[...] * scale * valid_ref[...]).astype(o_ref.dtype)


def _pack_heads(kt, vt, head_mask, tns):
    """kt,vt:(Ns,HD) -> KT:(HD, H*Ns), VP:(H*Ns, HD) head-block packed (bf16).

    Row/column index g = j*H*tns + h*tns + t corresponds to source node j*tns+t,
    head h, with only that head's feature lanes kept (others zeroed)."""
    Ns, HD = kt.shape
    H = head_mask.shape[0]
    T = Ns // tns

    def pack(x):
        xh = x[None, :, :] * head_mask[:, None, :]                # (H, Ns, HD)
        xh = xh.reshape(H, T, tns, HD).transpose(1, 0, 2, 3)      # (T, H, tns, HD)
        return xh.reshape(T * H * tns, HD).astype(MXU_DTYPE)

    return pack(kt).T, pack(vt)


def pallas_hgt_attention(q, kt, vt, mask, valid, head_mask,
                         *, tq_pref=256, tns_pref=512):
    """q:(Nd,HD) kt,vt:(Ns,HD) (rel-transformed) mask:(Nd,Ns) int8 valid:(Nd,1)
    head_mask:(H,HD) -> (Nd,HD) f32."""
    Nd, HD = q.shape
    Ns = kt.shape[0]
    H = head_mask.shape[0]
    tq = _choose_tile(Nd, tq_pref, 32)     # int8 mask sublane alignment
    tns = _choose_tile(Ns, tns_pref, 128)  # mask lane / packed-K lane alignment

    ktp, vtp = _pack_heads(kt, vt, head_mask, tns)                   # bf16
    seg = jnp.repeat(jnp.eye(H, dtype=MXU_DTYPE), tns, axis=0)       # (H*tns, H)

    kernel = functools.partial(_hgt_attn_kernel, heads=H)
    return pl.pallas_call(
        kernel,
        out_shape=jax.ShapeDtypeStruct((Nd, HD), jnp.float32),
        grid=(Nd // tq, Ns // tns),
        in_specs=[
            pl.BlockSpec((tq, HD), lambda i, j: (i, 0)),
            pl.BlockSpec((HD, H * tns), lambda i, j: (0, j)),
            pl.BlockSpec((H * tns, HD), lambda i, j: (j, 0)),
            pl.BlockSpec((tq, tns), lambda i, j: (i, j)),
            pl.BlockSpec((tq, 1), lambda i, j: (i, 0)),
            pl.BlockSpec((H * tns, H), lambda i, j: (0, 0)),
            pl.BlockSpec((H, HD), lambda i, j: (0, 0)),
        ],
        out_specs=pl.BlockSpec((tq, HD), lambda i, j: (i, 0)),
        scratch_shapes=[pltpu.VMEM((tq, 1), jnp.float32),
                        pltpu.VMEM((tq, H), jnp.float32),
                        pltpu.VMEM((tq, HD), jnp.float32)],
        compiler_params=pltpu.CompilerParams(
            dimension_semantics=("parallel", "arbitrary"),
            vmem_limit_bytes=_VMEM_LIMIT),
    )(q.astype(MXU_DTYPE), ktp, vtp, mask, valid, seg, head_mask)


# --------------------------------------------------------------- pair score --

def _pair_score_kernel(a_ref, b_ref, o_ref):
    o_ref[...] = jnp.sum(a_ref[...] * b_ref[...], axis=0,
                         keepdims=True).astype(o_ref.dtype)


def pallas_pair_score(a_t, b_t):
    """Column-wise dot products; a_t,b_t:(C,E) channel-major -> (1,E) lane-dense."""
    C, E = a_t.shape
    te = _choose_tile(E, 512, 128)
    return pl.pallas_call(
        _pair_score_kernel,
        out_shape=jax.ShapeDtypeStruct((1, E), jnp.float32),
        grid=(E // te,),
        in_specs=[pl.BlockSpec((C, te), lambda i: (0, i)),
                  pl.BlockSpec((C, te), lambda i: (0, i))],
        out_specs=pl.BlockSpec((1, te), lambda i: (0, i)),
        compiler_params=pltpu.CompilerParams(
            dimension_semantics=("parallel",),
            vmem_limit_bytes=_VMEM_LIMIT),
    )(a_t, b_t)


# --------------------------------------------------------------- parameters --

def _glorot(key, shape):
    fan_in, fan_out = shape[-2], shape[-1]
    lim = math.sqrt(6.0 / (fan_in + fan_out))
    return jax.random.uniform(key, shape, jnp.float32, -lim, lim)


def init_params(key, node_in_dims, node_types, edge_types, hidden, heads, layers):
    D = hidden // heads
    params = {"lin_dict": {}, "convs": []}
    for nt in node_types:
        key, k1 = jax.random.split(key)
        params["lin_dict"][nt] = {"w": _glorot(k1, (node_in_dims[nt], hidden)),
                                  "b": jnp.zeros((hidden,), jnp.float32)}
    for _ in range(layers):
        conv = {"k_lin": {}, "q_lin": {}, "v_lin": {}, "a_lin": {}, "skip": {},
                "a_rel": {}, "m_rel": {}, "p_rel": {}}
        for nt in node_types:
            for name in ("k_lin", "q_lin", "v_lin", "a_lin"):
                key, k1 = jax.random.split(key)
                conv[name][nt] = {"w": _glorot(k1, (hidden, hidden)),
                                  "b": jnp.zeros((hidden,), jnp.float32)}
            conv["skip"][nt] = jnp.float32(1.0)
        for et in edge_types:
            ek = "__".join(et)
            key, k1, k2 = jax.random.split(key, 3)
            conv["a_rel"][ek] = _glorot(k1, (heads, D, D))
            conv["m_rel"][ek] = _glorot(k2, (heads, D, D))
            conv["p_rel"][ek] = jnp.ones((heads,), jnp.float32)
        params["convs"].append(conv)
    # NOTE: self.fc = Linear(hidden*2, 2) exists in __init__ but is unused in forward.
    return params


# ------------------------------------------------------------------ forward --

def _block_diag_heads(mats):
    """(H, D, D) -> (H*D, H*D) block diagonal."""
    return jax.scipy.linalg.block_diag(*[mats[h] for h in range(mats.shape[0])])


def hgt_conv_forward(conv, x_dict, edge_static, head_mask, edge_types, heads, hidden):
    D = hidden // heads
    src_ets = {nt: [et for et in edge_types if et[0] == nt] for nt in x_dict}

    # Fused per-node-type projection: [Q | (K@A_rel_scaled | V@M_rel) per outgoing
    # edge type], zero-padded to a multiple of 128 output lanes (lane-dense stores).
    # The rel transforms (+ p_rel/sqrt(D)) are folded into the weights in JAX.
    q_dict, kv_dict = {}, {}
    for nt, x in x_dict.items():
        w_parts = [conv["q_lin"][nt]["w"]]
        b_parts = [conv["q_lin"][nt]["b"]]
        offsets = []
        off = hidden
        for et in src_ets[nt]:
            ek = "__".join(et)
            a_scaled = conv["a_rel"][ek] * (conv["p_rel"][ek].reshape(heads, 1, 1)
                                            / math.sqrt(D))
            A_bd = _block_diag_heads(a_scaled)                   # (hidden, hidden)
            M_bd = _block_diag_heads(conv["m_rel"][ek])
            w_parts += [conv["k_lin"][nt]["w"] @ A_bd, conv["v_lin"][nt]["w"] @ M_bd]
            b_parts += [conv["k_lin"][nt]["b"] @ A_bd, conv["v_lin"][nt]["b"] @ M_bd]
            offsets.append(off)
            off += 2 * hidden
        W = jnp.concatenate(w_parts, axis=1)
        b = jnp.concatenate(b_parts, axis=0)
        pad = (-W.shape[1]) % 128
        if pad:
            W = jnp.pad(W, ((0, 0), (0, pad)))
            b = jnp.pad(b, ((0, pad),))
        proj = pallas_matmul(x, W, b)                            # (n, padded) f32
        q_dict[nt] = proj[:, :hidden]
        kv_dict[nt] = {et: (proj[:, o:o + hidden], proj[:, o + hidden:o + 2 * hidden])
                       for et, o in zip(src_ets[nt], offsets)}

    out_acc = {nt: None for nt in x_dict}
    for et in edge_types:
        src_t, _, dst_t = et
        kt, vt = kv_dict[src_t][et]
        es = edge_static[et]
        out = pallas_hgt_attention(q_dict[dst_t], kt, vt,
                                   es["mask"], es["valid"], head_mask)
        # TODO(synk): accumulate across edge types in-kernel via input_output_aliases
        # instead of this XLA add.
        out_acc[dst_t] = out if out_acc[dst_t] is None else out_acc[dst_t] + out

    new_x = {}
    for nt, x in x_dict.items():
        agg = out_acc[nt]
        if agg is None:
            agg = jnp.zeros((x.shape[0], hidden), jnp.float32)
        # TODO(synk): gelu (exact, erf-based) could be fused as an input-side
        # activation of the a_lin matmul once erf lowering inside Pallas is assured.
        o = pallas_matmul(jax.nn.gelu(agg, approximate=False),
                          conv["a_lin"][nt]["w"], conv["a_lin"][nt]["b"])
        alpha = jax.nn.sigmoid(conv["skip"][nt])
        new_x[nt] = alpha * o + (1.0 - alpha) * x
    return new_x


def hgt_old_forward(params, x_dict_, edge_index_dict, edge_index,
                    node_types, edge_types, heads, hidden):
    D = hidden // heads
    # one-hot head masks over the feature lanes: hm[h, j] = 1 iff j // D == h
    head_mask = jnp.repeat(jnp.eye(heads, dtype=jnp.float32), D, axis=1)

    # hoisted per-edge-type structure (identical across layers): int8 edge mask,
    # f32 "has at least one incoming edge" indicator.
    edge_static = {}
    for et in edge_types:
        src_t, _, dst_t = et
        ei = edge_index_dict[et]                # (2, E): row0 = src ids, row1 = dst
        n_src = x_dict_[src_t].shape[0]
        n_dst = x_dict_[dst_t].shape[0]
        m = jnp.zeros((n_dst, n_src), jnp.float32).at[ei[1], ei[0]].set(1.0)
        edge_static[et] = {
            "mask": m.astype(jnp.int8),
            "valid": (jnp.sum(m, axis=1, keepdims=True) > 0).astype(jnp.float32),
        }

    x_dict = {nt: pallas_matmul(x_dict_[nt], params["lin_dict"][nt]["w"],
                                params["lin_dict"][nt]["b"], activation="relu")
              for nt in node_types}
    all_list = []
    for conv in params["convs"]:
        x_dict = hgt_conv_forward(conv, x_dict, edge_static, head_mask,
                                  edge_types, heads, hidden)
        all_list.append(dict(x_dict))

    cat = {nt: jnp.concatenate([xd[nt] for xd in all_list], axis=1)
           for nt in node_types}
    # TODO(synk): torch.nn.Dropout(0.5) in training mode is stochastic (torch RNG);
    # modeled here as identity (eval-mode semantics).
    em, ed = cat["n1"], cat["n2"]
    em_g = jnp.take(em, edge_index[0], axis=0)
    ed_g = jnp.take(ed, edge_index[1], axis=0)
    # TODO(synk): the (E, C) gathers could move in-kernel via scalar-prefetched indices
    # (PrefetchScalarGridSpec) to avoid the HBM round trip.
    y = pallas_pair_score(em_g.T, ed_g.T)          # (1, E) lane-dense scores
    return y.reshape(-1, 1)                        # (E, 1)


# --------------------------------------------------------- pure-JAX reference

def ref_forward(params, x_dict_, edge_index_dict, edge_index,
                node_types, edge_types, heads, hidden):
    D = hidden // heads
    x_dict = {nt: jnp.maximum(x_dict_[nt] @ params["lin_dict"][nt]["w"]
                              + params["lin_dict"][nt]["b"], 0.0)
              for nt in node_types}
    all_list = []
    for conv in params["convs"]:
        kd, qd, vd = {}, {}, {}
        for nt, x in x_dict.items():
            n = x.shape[0]
            kd[nt] = (x @ conv["k_lin"][nt]["w"] + conv["k_lin"][nt]["b"]).reshape(n, heads, D)
            qd[nt] = (x @ conv["q_lin"][nt]["w"] + conv["q_lin"][nt]["b"]).reshape(n, heads, D)
            vd[nt] = (x @ conv["v_lin"][nt]["w"] + conv["v_lin"][nt]["b"]).reshape(n, heads, D)
        out_acc = {nt: jnp.zeros((x_dict[nt].shape[0], hidden), jnp.float32)
                   for nt in node_types}
        for et in edge_types:
            src_t, _, dst_t = et
            ek = "__".join(et)
            ei = edge_index_dict[et]
            n_src, n_dst = x_dict[src_t].shape[0], x_dict[dst_t].shape[0]
            mask = jnp.zeros((n_dst, n_src), jnp.float32).at[ei[1], ei[0]].set(1.0)
            outs = []
            for h in range(heads):
                kh = kd[src_t][:, h, :] @ conv["a_rel"][ek][h]
                vh = vd[src_t][:, h, :] @ conv["m_rel"][ek][h]
                s = (qd[dst_t][:, h, :] @ kh.T) * conv["p_rel"][ek][h] / math.sqrt(D)
                s = jnp.where(mask > 0, s, -1e30)
                p = jnp.exp(s - s.max(axis=-1, keepdims=True)) * mask
                den = p.sum(axis=-1, keepdims=True)
                outs.append((p / jnp.maximum(den, 1e-30)) @ vh)
            out_acc[dst_t] = out_acc[dst_t] + jnp.stack(outs, 1).reshape(n_dst, hidden)
        new_x = {}
        for nt, x in x_dict.items():
            o = jax.nn.gelu(out_acc[nt], approximate=False) @ conv["a_lin"][nt]["w"] \
                + conv["a_lin"][nt]["b"]
            alpha = jax.nn.sigmoid(conv["skip"][nt])
            new_x[nt] = alpha * o + (1.0 - alpha) * x
        x_dict = new_x
        all_list.append(dict(x_dict))
    em = jnp.concatenate([xd["n1"] for xd in all_list], axis=1)
    ed = jnp.concatenate([xd["n2"] for xd in all_list], axis=1)
    y = em @ ed.T
    return y[edge_index[0], edge_index[1]][:, None]


# --------------------------------------------------------------------- main --

if __name__ == "__main__":
    hidden, heads, layers = 32, 4, 2
    node_types = ("n1", "n2")
    edge_types = (("n1", "to", "n2"), ("n2", "rev_to", "n1"))
    N1, N2 = 16, 12
    F1, F2 = 8, 10

    key = jax.random.PRNGKey(0)
    key, k1, k2, k3, k4, k5, k6, k7 = jax.random.split(key, 8)
    x_dict = {"n1": jax.random.normal(k1, (N1, F1), jnp.float32),
              "n2": jax.random.normal(k2, (N2, F2), jnp.float32)}
    e12 = jnp.stack([jax.random.randint(k3, (24,), 0, N1),
                     jax.random.randint(k4, (24,), 0, N2)]).astype(jnp.int32)
    e21 = jnp.stack([jax.random.randint(k5, (24,), 0, N2),
                     jax.random.randint(k6, (24,), 0, N1)]).astype(jnp.int32)
    edge_index_dict = {edge_types[0]: e12, edge_types[1]: e21}
    pred_edge_index = jnp.stack([jax.random.randint(k7, (10,), 0, N1),
                                 jax.random.randint(key, (10,), 0, N2)]).astype(jnp.int32)

    params = init_params(jax.random.PRNGKey(42), {"n1": F1, "n2": F2},
                         node_types, edge_types, hidden, heads, layers)

    fwd = jax.jit(hgt_old_forward,
                  static_argnames=("node_types", "edge_types", "heads", "hidden"))
    y = fwd(params, x_dict, edge_index_dict, pred_edge_index,
            node_types=node_types, edge_types=edge_types, heads=heads, hidden=hidden)
    y = jax.block_until_ready(y)
    assert y.shape == (10, 1)

    y_ref = ref_forward(params, x_dict, edge_index_dict, pred_edge_index,
                        node_types, edge_types, heads, hidden)
    # bf16 MXU operands (f32 accumulation) vs. the pure-f32 reference across two
    # graph-conv layers -> compare with bf16-appropriate tolerances.
    np.testing.assert_allclose(np.asarray(y), np.asarray(y_ref),
                               rtol=5e-2, atol=1e-1)
    print("KERNEL_OK")
</pallas_src>

<mosaic_0001>
module attributes {stable_mosaic.version = 11 : i64} {
  func.func @_matmul_kernel(%arg0: i32, %arg1: i32, %arg2: i32, %arg3: memref<12x10xbf16, #tpu.memory_space<vmem>>, %arg4: memref<10x32xbf16, #tpu.memory_space<vmem>>, %arg5: memref<1x32xf32, #tpu.memory_space<vmem>>, %arg6: memref<12x32xf32, #tpu.memory_space<vmem>>, %arg7: memref<12x32xf32, #tpu.memory_space<vmem>>) attributes {dimension_semantics = [#tpu.dimension_semantics<parallel>, #tpu.dimension_semantics<parallel>, #tpu.dimension_semantics<arbitrary>], iteration_bounds = array<i64: 1, 1, 1>, scalar_prefetch = 0 : i64, scratch_operands = 1 : i64, tpu.core_type = #tpu.core_type<tc>, window_params = [{transform_indices = @transform_0, window_bounds = array<i64: 12, 10>}, {transform_indices = @transform_1, window_bounds = array<i64: 10, 32>}, {transform_indices = @transform_2, window_bounds = array<i64: 1, 32>}, {transform_indices = @transform_3, window_bounds = array<i64: 12, 32>}]} {
    %c0_i32 = arith.constant 0 : i32
    %0 = arith.cmpi eq, %arg2, %c0_i32 : i32
    %1 = arith.extui %0 : i1 to i32
    %c0_i32_0 = arith.constant 0 : i32
    %2 = arith.cmpi ne, %1, %c0_i32_0 : i32
    scf.if %2 {
      %cst_10 = arith.constant 0.000000e+00 : f32
      %12 = vector.broadcast %cst_10 : f32 to vector<12x32xf32>
      %c0_11 = arith.constant 0 : index
      %c0_12 = arith.constant 0 : index
      %13 = vector.load %arg7[%c0_11, %c0_12] : memref<12x32xf32, #tpu.memory_space<vmem>>, vector<12x32xf32>
      tpu.vector_store %arg7[%c0_11, %c0_12], %12 {strides = array<i32>} : memref<12x32xf32, #tpu.memory_space<vmem>>, vector<12x32xf32>,
    } else {
    }
    %c0 = arith.constant 0 : index
    %c0_1 = arith.constant 0 : index
    %3 = vector.load %arg7[%c0, %c0_1] : memref<12x32xf32, #tpu.memory_space<vmem>>, vector<12x32xf32>
    %c0_2 = arith.constant 0 : index
    %c0_3 = arith.constant 0 : index
    %4 = vector.load %arg3[%c0_2, %c0_3] : memref<12x10xbf16, #tpu.memory_space<vmem>>, vector<12x10xbf16>
    %c0_4 = arith.constant 0 : index
    %c0_5 = arith.constant 0 : index
    %5 = vector.load %arg4[%c0_4, %c0_5] : memref<10x32xbf16, #tpu.memory_space<vmem>>, vector<10x32xbf16>
    %cst = arith.constant dense<0.000000e+00> : vector<12x32xf32>
    %6 = tpu.matmul %4, %5, %cst {dimension_numbers = #tpu.dot_dimension_numbers<[1], [0], [0], [1], [0, 0, 1, 1], [], []>} : vector<12x10xbf16>, vector<10x32xbf16>, vector<12x32xf32> -> vector<12x32xf32>
    %7 = arith.addf %3, %6 : vector<12x32xf32>
    %c0_6 = arith.constant 0 : index
    %c0_7 = arith.constant 0 : index
    %8 = vector.load %arg7[%c0_6, %c0_7] : memref<12x32xf32, #tpu.memory_space<vmem>>, vector<12x32xf32>
    tpu.vector_store %arg7[%c0_6, %c0_7], %7 {strides = array<i32>} : memref<12x32xf32, #tpu.memory_space<vmem>>, vector<12x32xf32>,
    %c0_i32_8 = arith.constant 0 : i32
    %9 = arith.cmpi eq, %arg2, %c0_i32_8 : i32
    %10 = arith.extui %9 : i1 to i32
    %c0_i32_9 = arith.constant 0 : i32
    %11 = arith.cmpi ne, %10, %c0_i32_9 : i32
    scf.if %11 {
      %c0_10 = arith.constant 0 : index
      %c0_11 = arith.constant 0 : index
      %12 = vector.load %arg7[%c0_10, %c0_11] : memref<12x32xf32, #tpu.memory_space<vmem>>, vector<12x32xf32>
      %c0_12 = arith.constant 0 : index
      %c0_13 = arith.constant 0 : index
      %13 = vector.load %arg5[%c0_12, %c0_13] : memref<1x32xf32, #tpu.memory_space<vmem>>, vector<1x32xf32>
      %14 = vector.broadcast %13 : vector<1x32xf32> to vector<12x32xf32>
      %15 = arith.addf %12, %14 : vector<12x32xf32>
      %cst_14 = arith.constant 0.000000e+00 : f32
      %16 = vector.broadcast %cst_14 : f32 to vector<12x32xf32>
      %17 = arith.maximumf %15, %16 : vector<12x32xf32>
      %c0_15 = arith.constant 0 : index
      %c0_16 = arith.constant 0 : index
      %18 = vector.load %arg6[%c0_15, %c0_16] : memref<12x32xf32, #tpu.memory_space<vmem>>, vector<12x32xf32>
      tpu.vector_store %arg6[%c0_15, %c0_16], %17 {strides = array<i32>} : memref<12x32xf32, #tpu.memory_space<vmem>>, vector<12x32xf32>,
    } else {
    }
    return
  }
  func.func @transform_0(%arg0: i32, %arg1: i32, %arg2: i32) -> (i32, i32) {
    %c0_i32 = arith.constant 0 : i32
    return %arg0, %arg2 : i32, i32
  }
  func.func @transform_1(%arg0: i32, %arg1: i32, %arg2: i32) -> (i32, i32) {
    %c0_i32 = arith.constant 0 : i32
    return %arg2, %arg1 : i32, i32
  }
  func.func @transform_2(%arg0: i32, %arg1: i32, %arg2: i32) -> (i32, i32) {
    %c0_i32 = arith.constant 0 : i32
    %c0_i32_0 = arith.constant 0 : i32
    return %c0_i32, %arg1 : i32, i32
  }
  func.func @transform_3(%arg0: i32, %arg1: i32, %arg2: i32) -> (i32, i32) {
    %c0_i32 = arith.constant 0 : i32
    return %arg0, %arg1 : i32, i32
  }
}

module attributes {stable_mosaic.version = 11 : i64} {
  func.func @_matmul_kernel(%arg0: i32, %arg1: i32, %arg2: i32, %arg3: memref<12x32xbf16, #tpu.memory_space<vmem>>, %arg4: memref<32x128xbf16, #tpu.memory_space<vmem>>, %arg5: memref<1x128xf32, #tpu.memory_space<vmem>>, %arg6: memref<12x128xf32, #tpu.memory_space<vmem>>, %arg7: memref<12x128xf32, #tpu.memory_space<vmem>>) attributes {dimension_semantics = [#tpu.dimension_semantics<parallel>, #tpu.dimension_semantics<parallel>, #tpu.dimension_semantics<arbitrary>], iteration_bounds = array<i64: 1, 1, 1>, scalar_prefetch = 0 : i64, scratch_operands = 1 : i64, tpu.core_type = #tpu.core_type<tc>, window_params = [{transform_indices = @transform_0, window_bounds = array<i64: 12, 32>}, {transform_indices = @transform_1, window_bounds = array<i64: 32, 128>}, {transform_indices = @transform_2, window_bounds = array<i64: 1, 128>}, {transform_indices = @transform_3, window_bounds = array<i64: 12, 128>}]} {
    %c0_i32 = arith.constant 0 : i32
    %0 = arith.cmpi eq, %arg2, %c0_i32 : i32
    %1 = arith.extui %0 : i1 to i32
    %c0_i32_0 = arith.constant 0 : i32
    %2 = arith.cmpi ne, %1, %c0_i32_0 : i32
    scf.if %2 {
      %cst_10 = arith.constant 0.000000e+00 : f32
      %12 = vector.broadcast %cst_10 : f32 to vector<12x128xf32>
      %c0_11 = arith.constant 0 : index
      %c0_12 = arith.constant 0 : index
      %13 = vector.load %arg7[%c0_11, %c0_12] : memref<12x128xf32, #tpu.memory_space<vmem>>, vector<12x128xf32>
      tpu.vector_store %arg7[%c0_11, %c0_12], %12 {strides = array<i32>} : memref<12x128xf32, #tpu.memory_space<vmem>>, vector<12x128xf32>,
    } else {
    }
    %c0 = arith.constant 0 : index
    %c0_1 = arith.constant 0 : index
    %3 = vector.load %arg7[%c0, %c0_1] : memref<12x128xf32, #tpu.memory_space<vmem>>, vector<12x128xf32>
    %c0_2 = arith.constant 0 : index
    %c0_3 = arith.constant 0 : index
    %4 = vector.load %arg3[%c0_2, %c0_3] : memref<12x32xbf16, #tpu.memory_space<vmem>>, vector<12x32xbf16>
    %c0_4 = arith.constant 0 : index
    %c0_5 = arith.constant 0 : index
    %5 = vector.load %arg4[%c0_4, %c0_5] : memref<32x128xbf16, #tpu.memory_space<vmem>>, vector<32x128xbf16>
    %cst = arith.constant dense<0.000000e+00> : vector<12x128xf32>
    %6 = tpu.matmul %4, %5, %cst {dimension_numbers = #tpu.dot_dimension_numbers<[1], [0], [0], [1], [0, 0, 1, 1], [], []>} : vector<12x32xbf16>, vector<32x128xbf16>, vector<12x128xf32> -> vector<12x128xf32>
    %7 = arith.addf %3, %6 : vector<12x128xf32>
    %c0_6 = arith.constant 0 : index
    %c0_7 = arith.constant 0 : index
    %8 = vector.load %arg7[%c0_6, %c0_7] : memref<12x128xf32, #tpu.memory_space<vmem>>, vector<12x128xf32>
    tpu.vector_store %arg7[%c0_6, %c0_7], %7 {strides = array<i32>} : memref<12x128xf32, #tpu.memory_space<vmem>>, vector<12x128xf32>,
    %c0_i32_8 = arith.constant 0 : i32
    %9 = arith.cmpi eq, %arg2, %c0_i32_8 : i32
    %10 = arith.extui %9 : i1 to i32
    %c0_i32_9 = arith.constant 0 : i32
    %11 = arith.cmpi ne, %10, %c0_i32_9 : i32
    scf.if %11 {
      %c0_10 = arith.constant 0 : index
      %c0_11 = arith.constant 0 : index
      %12 = vector.load %arg7[%c0_10, %c0_11] : memref<12x128xf32, #tpu.memory_space<vmem>>, vector<12x128xf32>
      %c0_12 = arith.constant 0 : index
      %c0_13 = arith.constant 0 : index
      %13 = vector.load %arg5[%c0_12, %c0_13] : memref<1x128xf32, #tpu.memory_space<vmem>>, vector<1x128xf32>
      %14 = vector.broadcast %13 : vector<1x128xf32> to vector<12x128xf32>
      %15 = arith.addf %12, %14 : vector<12x128xf32>
      %c0_14 = arith.constant 0 : index
      %c0_15 = arith.constant 0 : index
      %16 = vector.load %arg6[%c0_14, %c0_15] : memref<12x128xf32, #tpu.memory_space<vmem>>, vector<12x128xf32>
      tpu.vector_store %arg6[%c0_14, %c0_15], %15 {strides = array<i32>} : memref<12x128xf32, #tpu.memory_space<vmem>>, vector<12x128xf32>,
    } else {
    }
    return
  }
  func.func @transform_0(%arg0: i32, %arg1: i32, %arg2: i32) -> (i32, i32) {
    %c0_i32 = arith.constant 0 : i32
    return %arg0, %arg2 : i32, i32
  }
  func.func @transform_1(%arg0: i32, %arg1: i32, %arg2: i32) -> (i32, i32) {
    %c0_i32 = arith.constant 0 : i32
    return %arg2, %arg1 : i32, i32
  }
  func.func @transform_2(%arg0: i32, %arg1: i32, %arg2: i32) -> (i32, i32) {
    %c0_i32 = arith.constant 0 : i32
    %c0_i32_0 = arith.constant 0 : i32
    return %c0_i32, %arg1 : i32, i32
  }
  func.func @transform_3(%arg0: i32, %arg1: i32, %arg2: i32) -> (i32, i32) {
    %c0_i32 = arith.constant 0 : i32
    return %arg0, %arg1 : i32, i32
  }
}

module attributes {stable_mosaic.version = 11 : i64} {
  func.func @_matmul_kernel(%arg0: i32, %arg1: i32, %arg2: i32, %arg3: memref<16x32xbf16, #tpu.memory_space<vmem>>, %arg4: memref<32x128xbf16, #tpu.memory_space<vmem>>, %arg5: memref<1x128xf32, #tpu.memory_space<vmem>>, %arg6: memref<16x128xf32, #tpu.memory_space<vmem>>, %arg7: memref<16x128xf32, #tpu.memory_space<vmem>>) attributes {dimension_semantics = [#tpu.dimension_semantics<parallel>, #tpu.dimension_semantics<parallel>, #tpu.dimension_semantics<arbitrary>], iteration_bounds = array<i64: 1, 1, 1>, scalar_prefetch = 0 : i64, scratch_operands = 1 : i64, tpu.core_type = #tpu.core_type<tc>, window_params = [{transform_indices = @transform_0, window_bounds = array<i64: 16, 32>}, {transform_indices = @transform_1, window_bounds = array<i64: 32, 128>}, {transform_indices = @transform_2, window_bounds = array<i64: 1, 128>}, {transform_indices = @transform_3, window_bounds = array<i64: 16, 128>}]} {
    %c0_i32 = arith.constant 0 : i32
    %0 = arith.cmpi eq, %arg2, %c0_i32 : i32
    %1 = arith.extui %0 : i1 to i32
    %c0_i32_0 = arith.constant 0 : i32
    %2 = arith.cmpi ne, %1, %c0_i32_0 : i32
    scf.if %2 {
      %cst_10 = arith.constant 0.000000e+00 : f32
      %12 = vector.broadcast %cst_10 : f32 to vector<16x128xf32>
      %c0_11 = arith.constant 0 : index
      %c0_12 = arith.constant 0 : index
      %13 = vector.load %arg7[%c0_11, %c0_12] : memref<16x128xf32, #tpu.memory_space<vmem>>, vector<16x128xf32>
      tpu.vector_store %arg7[%c0_11, %c0_12], %12 {strides = array<i32>} : memref<16x128xf32, #tpu.memory_space<vmem>>, vector<16x128xf32>,
    } else {
    }
    %c0 = arith.constant 0 : index
    %c0_1 = arith.constant 0 : index
    %3 = vector.load %arg7[%c0, %c0_1] : memref<16x128xf32, #tpu.memory_space<vmem>>, vector<16x128xf32>
    %c0_2 = arith.constant 0 : index
    %c0_3 = arith.constant 0 : index
    %4 = vector.load %arg3[%c0_2, %c0_3] : memref<16x32xbf16, #tpu.memory_space<vmem>>, vector<16x32xbf16>
    %c0_4 = arith.constant 0 : index
    %c0_5 = arith.constant 0 : index
    %5 = vector.load %arg4[%c0_4, %c0_5] : memref<32x128xbf16, #tpu.memory_space<vmem>>, vector<32x128xbf16>
    %cst = arith.constant dense<0.000000e+00> : vector<16x128xf32>
    %6 = tpu.matmul %4, %5, %cst {dimension_numbers = #tpu.dot_dimension_numbers<[1], [0], [0], [1], [0, 0, 1, 1], [], []>} : vector<16x32xbf16>, vector<32x128xbf16>, vector<16x128xf32> -> vector<16x128xf32>
    %7 = arith.addf %3, %6 : vector<16x128xf32>
    %c0_6 = arith.constant 0 : index
    %c0_7 = arith.constant 0 : index
    %8 = vector.load %arg7[%c0_6, %c0_7] : memref<16x128xf32, #tpu.memory_space<vmem>>, vector<16x128xf32>
    tpu.vector_store %arg7[%c0_6, %c0_7], %7 {strides = array<i32>} : memref<16x128xf32, #tpu.memory_space<vmem>>, vector<16x128xf32>,
    %c0_i32_8 = arith.constant 0 : i32
    %9 = arith.cmpi eq, %arg2, %c0_i32_8 : i32
    %10 = arith.extui %9 : i1 to i32
    %c0_i32_9 = arith.constant 0 : i32
    %11 = arith.cmpi ne, %10, %c0_i32_9 : i32
    scf.if %11 {
      %c0_10 = arith.constant 0 : index
      %c0_11 = arith.constant 0 : index
      %12 = vector.load %arg7[%c0_10, %c0_11] : memref<16x128xf32, #tpu.memory_space<vmem>>, vector<16x128xf32>
      %c0_12 = arith.constant 0 : index
      %c0_13 = arith.constant 0 : index
      %13 = vector.load %arg5[%c0_12, %c0_13] : memref<1x128xf32, #tpu.memory_space<vmem>>, vector<1x128xf32>
      %14 = vector.broadcast %13 : vector<1x128xf32> to vector<16x128xf32>
      %15 = arith.addf %12, %14 : vector<16x128xf32>
      %c0_14 = arith.constant 0 : index
      %c0_15 = arith.constant 0 : index
      %16 = vector.load %arg6[%c0_14, %c0_15] : memref<16x128xf32, #tpu.memory_space<vmem>>, vector<16x128xf32>
      tpu.vector_store %arg6[%c0_14, %c0_15], %15 {strides = array<i32>} : memref<16x128xf32, #tpu.memory_space<vmem>>, vector<16x128xf32>,
    } else {
    }
    return
  }
  func.func @transform_0(%arg0: i32, %arg1: i32, %arg2: i32) -> (i32, i32) {
    %c0_i32 = arith.constant 0 : i32
    return %arg0, %arg2 : i32, i32
  }
  func.func @transform_1(%arg0: i32, %arg1: i32, %arg2: i32) -> (i32, i32) {
    %c0_i32 = arith.constant 0 : i32
    return %arg2, %arg1 : i32, i32
  }
  func.func @transform_2(%arg0: i32, %arg1: i32, %arg2: i32) -> (i32, i32) {
    %c0_i32 = arith.constant 0 : i32
    %c0_i32_0 = arith.constant 0 : i32
    return %c0_i32, %arg1 : i32, i32
  }
  func.func @transform_3(%arg0: i32, %arg1: i32, %arg2: i32) -> (i32, i32) {
    %c0_i32 = arith.constant 0 : i32
    return %arg0, %arg1 : i32, i32
  }
}

module attributes {stable_mosaic.version = 11 : i64} {
  func.func @_matmul_kernel(%arg0: i32, %arg1: i32, %arg2: i32, %arg3: memref<16x8xbf16, #tpu.memory_space<vmem>>, %arg4: memref<8x32xbf16, #tpu.memory_space<vmem>>, %arg5: memref<1x32xf32, #tpu.memory_space<vmem>>, %arg6: memref<16x32xf32, #tpu.memory_space<vmem>>, %arg7: memref<16x32xf32, #tpu.memory_space<vmem>>) attributes {dimension_semantics = [#tpu.dimension_semantics<parallel>, #tpu.dimension_semantics<parallel>, #tpu.dimension_semantics<arbitrary>], iteration_bounds = array<i64: 1, 1, 1>, scalar_prefetch = 0 : i64, scratch_operands = 1 : i64, tpu.core_type = #tpu.core_type<tc>, window_params = [{transform_indices = @transform_0, window_bounds = array<i64: 16, 8>}, {transform_indices = @transform_1, window_bounds = array<i64: 8, 32>}, {transform_indices = @transform_2, window_bounds = array<i64: 1, 32>}, {transform_indices = @transform_3, window_bounds = array<i64: 16, 32>}]} {
    %c0_i32 = arith.constant 0 : i32
    %0 = arith.cmpi eq, %arg2, %c0_i32 : i32
    %1 = arith.extui %0 : i1 to i32
    %c0_i32_0 = arith.constant 0 : i32
    %2 = arith.cmpi ne, %1, %c0_i32_0 : i32
    scf.if %2 {
      %cst_10 = arith.constant 0.000000e+00 : f32
      %12 = vector.broadcast %cst_10 : f32 to vector<16x32xf32>
      %c0_11 = arith.constant 0 : index
      %c0_12 = arith.constant 0 : index
      %13 = vector.load %arg7[%c0_11, %c0_12] : memref<16x32xf32, #tpu.memory_space<vmem>>, vector<16x32xf32>
      tpu.vector_store %arg7[%c0_11, %c0_12], %12 {strides = array<i32>} : memref<16x32xf32, #tpu.memory_space<vmem>>, vector<16x32xf32>,
    } else {
    }
    %c0 = arith.constant 0 : index
    %c0_1 = arith.constant 0 : index
    %3 = vector.load %arg7[%c0, %c0_1] : memref<16x32xf32, #tpu.memory_space<vmem>>, vector<16x32xf32>
    %c0_2 = arith.constant 0 : index
    %c0_3 = arith.constant 0 : index
    %4 = vector.load %arg3[%c0_2, %c0_3] : memref<16x8xbf16, #tpu.memory_space<vmem>>, vector<16x8xbf16>
    %c0_4 = arith.constant 0 : index
    %c0_5 = arith.constant 0 : index
    %5 = vector.load %arg4[%c0_4, %c0_5] : memref<8x32xbf16, #tpu.memory_space<vmem>>, vector<8x32xbf16>
    %cst = arith.constant dense<0.000000e+00> : vector<16x32xf32>
    %6 = tpu.matmul %4, %5, %cst {dimension_numbers = #tpu.dot_dimension_numbers<[1], [0], [0], [1], [0, 0, 1, 1], [], []>} : vector<16x8xbf16>, vector<8x32xbf16>, vector<16x32xf32> -> vector<16x32xf32>
    %7 = arith.addf %3, %6 : vector<16x32xf32>
    %c0_6 = arith.constant 0 : index
    %c0_7 = arith.constant 0 : index
    %8 = vector.load %arg7[%c0_6, %c0_7] : memref<16x32xf32, #tpu.memory_space<vmem>>, vector<16x32xf32>
    tpu.vector_store %arg7[%c0_6, %c0_7], %7 {strides = array<i32>} : memref<16x32xf32, #tpu.memory_space<vmem>>, vector<16x32xf32>,
    %c0_i32_8 = arith.constant 0 : i32
    %9 = arith.cmpi eq, %arg2, %c0_i32_8 : i32
    %10 = arith.extui %9 : i1 to i32
    %c0_i32_9 = arith.constant 0 : i32
    %11 = arith.cmpi ne, %10, %c0_i32_9 : i32
    scf.if %11 {
      %c0_10 = arith.constant 0 : index
      %c0_11 = arith.constant 0 : index
      %12 = vector.load %arg7[%c0_10, %c0_11] : memref<16x32xf32, #tpu.memory_space<vmem>>, vector<16x32xf32>
      %c0_12 = arith.constant 0 : index
      %c0_13 = arith.constant 0 : index
      %13 = vector.load %arg5[%c0_12, %c0_13] : memref<1x32xf32, #tpu.memory_space<vmem>>, vector<1x32xf32>
      %14 = vector.broadcast %13 : vector<1x32xf32> to vector<16x32xf32>
      %15 = arith.addf %12, %14 : vector<16x32xf32>
      %cst_14 = arith.constant 0.000000e+00 : f32
      %16 = vector.broadcast %cst_14 : f32 to vector<16x32xf32>
      %17 = arith.maximumf %15, %16 : vector<16x32xf32>
      %c0_15 = arith.constant 0 : index
      %c0_16 = arith.constant 0 : index
      %18 = vector.load %arg6[%c0_15, %c0_16] : memref<16x32xf32, #tpu.memory_space<vmem>>, vector<16x32xf32>
      tpu.vector_store %arg6[%c0_15, %c0_16], %17 {strides = array<i32>} : memref<16x32xf32, #tpu.memory_space<vmem>>, vector<16x32xf32>,
    } else {
    }
    return
  }
  func.func @transform_0(%arg0: i32, %arg1: i32, %arg2: i32) -> (i32, i32) {
    %c0_i32 = arith.constant 0 : i32
    return %arg0, %arg2 : i32, i32
  }
  func.func @transform_1(%arg0: i32, %arg1: i32, %arg2: i32) -> (i32, i32) {
    %c0_i32 = arith.constant 0 : i32
    return %arg2, %arg1 : i32, i32
  }
  func.func @transform_2(%arg0: i32, %arg1: i32, %arg2: i32) -> (i32, i32) {
    %c0_i32 = arith.constant 0 : i32
    %c0_i32_0 = arith.constant 0 : i32
    return %c0_i32, %arg1 : i32, i32
  }
  func.func @transform_3(%arg0: i32, %arg1: i32, %arg2: i32) -> (i32, i32) {
    %c0_i32 = arith.constant 0 : i32
    return %arg0, %arg1 : i32, i32
  }
}

module attributes {stable_mosaic.version = 11 : i64} {
  func.func @_hgt_attn_kernel(%arg0: i32, %arg1: i32, %arg2: memref<16x32xbf16, #tpu.memory_space<vmem>>, %arg3: memref<32x48xbf16, #tpu.memory_space<vmem>>, %arg4: memref<48x32xbf16, #tpu.memory_space<vmem>>, %arg5: memref<16x12xi8, #tpu.memory_space<vmem>>, %arg6: memref<16x1xf32, #tpu.memory_space<vmem>>, %arg7: memref<48x4xbf16, #tpu.memory_space<vmem>>, %arg8: memref<4x32xf32, #tpu.memory_space<vmem>>, %arg9: memref<16x32xf32, #tpu.memory_space<vmem>>, %arg10: memref<16x1xf32, #tpu.memory_space<vmem>>, %arg11: memref<16x4xf32, #tpu.memory_space<vmem>>, %arg12: memref<16x32xf32, #tpu.memory_space<vmem>>) attributes {dimension_semantics = [#tpu.dimension_semantics<parallel>, #tpu.dimension_semantics<arbitrary>], iteration_bounds = array<i64: 1, 1>, scalar_prefetch = 0 : i64, scratch_operands = 3 : i64, tpu.core_type = #tpu.core_type<tc>, window_params = [{transform_indices = @transform_0, window_bounds = array<i64: 16, 32>}, {transform_indices = @transform_1, window_bounds = array<i64: 32, 48>}, {transform_indices = @transform_2, window_bounds = array<i64: 48, 32>}, {transform_indices = @transform_3, window_bounds = array<i64: 16, 12>}, {transform_indices = @transform_4, window_bounds = array<i64: 16, 1>}, {pipeline_mode = #tpu.pipeline_mode<synchronous>, transform_indices = @transform_5, window_bounds = array<i64: 48, 4>}, {pipeline_mode = #tpu.pipeline_mode<synchronous>, transform_indices = @transform_6, window_bounds = array<i64: 4, 32>}, {transform_indices = @transform_7, window_bounds = array<i64: 16, 32>}]} {
    %c0_i32 = arith.constant 0 : i32
    %0 = arith.cmpi eq, %arg1, %c0_i32 : i32
    %1 = arith.extui %0 : i1 to i32
    %c0_i32_0 = arith.constant 0 : i32
    %2 = arith.cmpi ne, %1, %c0_i32_0 : i32
    scf.if %2 {
      %cst_29 = arith.constant -1.000000e+30 : f32
      %42 = vector.broadcast %cst_29 : f32 to vector<16x1xf32>
      %c0_30 = arith.constant 0 : index
      %c0_31 = arith.constant 0 : index
      %43 = vector.load %arg10[%c0_30, %c0_31] : memref<16x1xf32, #tpu.memory_space<vmem>>, vector<16x1xf32>
      tpu.vector_store %arg10[%c0_30, %c0_31], %42 {strides = array<i32>} : memref<16x1xf32, #tpu.memory_space<vmem>>, vector<16x1xf32>,
      %cst_32 = arith.constant 0.000000e+00 : f32
      %44 = vector.broadcast %cst_32 : f32 to vector<16x4xf32>
      %c0_33 = arith.constant 0 : index
      %c0_34 = arith.constant 0 : index
      %45 = vector.load %arg11[%c0_33, %c0_34] : memref<16x4xf32, #tpu.memory_space<vmem>>, vector<16x4xf32>
      tpu.vector_store %arg11[%c0_33, %c0_34], %44 {strides = array<i32>} : memref<16x4xf32, #tpu.memory_space<vmem>>, vector<16x4xf32>,
      %cst_35 = arith.constant 0.000000e+00 : f32
      %46 = vector.broadcast %cst_35 : f32 to vector<16x32xf32>
      %c0_36 = arith.constant 0 : index
      %c0_37 = arith.constant 0 : index
      %47 = vector.load %arg12[%c0_36, %c0_37] : memref<16x32xf32, #tpu.memory_space<vmem>>, vector<16x32xf32>
      tpu.vector_store %arg12[%c0_36, %c0_37], %46 {strides = array<i32>} : memref<16x32xf32, #tpu.memory_space<vmem>>, vector<16x32xf32>,
    } else {
    }
    %c0 = arith.constant 0 : index
    %c0_1 = arith.constant 0 : index
    %3 = vector.load %arg2[%c0, %c0_1] : memref<16x32xbf16, #tpu.memory_space<vmem>>, vector<16x32xbf16>
    %c0_2 = arith.constant 0 : index
    %c0_3 = arith.constant 0 : index
    %4 = vector.load %arg3[%c0_2, %c0_3] : memref<32x48xbf16, #tpu.memory_space<vmem>>, vector<32x48xbf16>
    %cst = arith.constant dense<0.000000e+00> : vector<16x48xf32>
    %5 = tpu.matmul %3, %4, %cst {dimension_numbers = #tpu.dot_dimension_numbers<[1], [0], [0], [1], [0, 0, 1, 1], [], []>} : vector<16x32xbf16>, vector<32x48xbf16>, vector<16x48xf32> -> vector<16x48xf32>
    %c0_4 = arith.constant 0 : index
    %c0_5 = arith.constant 0 : index
    %6 = vector.load %arg5[%c0_4, %c0_5] : memref<16x12xi8, #tpu.memory_space<vmem>>, vector<16x12xi8>
    %7 = arith.sitofp %6 : vector<16x12xi8> to vector<16x12xf32>
    %cst_6 = arith.constant 1.000000e+00 : f32
    %8 = vector.broadcast %cst_6 : f32 to vector<16x12xf32>
    %9 = arith.subf %7, %8 : vector<16x12xf32>
    %cst_7 = arith.constant 1.000000e+30 : f32
    %10 = vector.broadcast %cst_7 : f32 to vector<16x12xf32>
    %11 = arith.mulf %9, %10 : vector<16x12xf32>
    %12 = tpu.concatenate %11, %11, %11, %11 in 1 : vector<16x12xf32>, vector<16x12xf32>, vector<16x12xf32>, vector<16x12xf32> -> vector<16x48xf32>
    %13 = arith.addf %5, %12 : vector<16x48xf32>
    %c0_8 = arith.constant 0 : index
    %c0_9 = arith.constant 0 : index
    %14 = vector.load %arg10[%c0_8, %c0_9] : memref<16x1xf32, #tpu.memory_space<vmem>>, vector<16x1xf32>
    %cst_10 = arith.constant dense<0xFF800000> : vector<16xf32>
    %15 = vector.multi_reduction <maximumf>, %13, %cst_10 [1] : vector<16x48xf32> to vector<16xf32>
    %16 = vector.shape_cast %15 : vector<16xf32> to vector<16x1xf32>
    %17 = arith.maximumf %14, %16 : vector<16x1xf32>
    %18 = arith.subf %14, %17 : vector<16x1xf32>
    %19 = math.exp %18 : vector<16x1xf32>
    %20 = vector.broadcast %17 : vector<16x1xf32> to vector<16x48xf32>
    %21 = arith.subf %13, %20 : vector<16x48xf32>
    %22 = math.exp %21 : vector<16x48xf32>
    %23 = arith.truncf %22 : vector<16x48xf32> to vector<16x48xbf16>
    %c0_11 = arith.constant 0 : index
    %c0_12 = arith.constant 0 : index
    %24 = vector.load %arg11[%c0_11, %c0_12] : memref<16x4xf32, #tpu.memory_space<vmem>>, vector<16x4xf32>
    %25 = vector.broadcast %19 : vector<16x1xf32> to vector<16x4xf32>
    %26 = arith.mulf %25, %24 : vector<16x4xf32>
    %c0_13 = arith.constant 0 : index
    %c0_14 = arith.constant 0 : index
    %27 = vector.load %arg7[%c0_13, %c0_14] : memref<48x4xbf16, #tpu.memory_space<vmem>>, vector<48x4xbf16>
    %cst_15 = arith.constant dense<0.000000e+00> : vector<16x4xf32>
    %28 = tpu.matmul %23, %27, %cst_15 {dimension_numbers = #tpu.dot_dimension_numbers<[1], [0], [0], [1], [0, 0, 1, 1], [], []>} : vector<16x48xbf16>, vector<48x4xbf16>, vector<16x4xf32> -> vector<16x4xf32>
    %29 = arith.addf %26, %28 : vector<16x4xf32>
    %c0_16 = arith.constant 0 : index
    %c0_17 = arith.constant 0 : index
    %30 = vector.load %arg11[%c0_16, %c0_17] : memref<16x4xf32, #tpu.memory_space<vmem>>, vector<16x4xf32>
    tpu.vector_store %arg11[%c0_16, %c0_17], %29 {strides = array<i32>} : memref<16x4xf32, #tpu.memory_space<vmem>>, vector<16x4xf32>,
    %c0_18 = arith.constant 0 : index
    %c0_19 = arith.constant 0 : index
    %31 = vector.load %arg12[%c0_18, %c0_19] : memref<16x32xf32, #tpu.memory_space<vmem>>, vector<16x32xf32>
    %32 = vector.broadcast %19 : vector<16x1xf32> to vector<16x32xf32>
    %33 = arith.mulf %32, %31 : vector<16x32xf32>
    %c0_20 = arith.constant 0 : index
    %c0_21 = arith.constant 0 : index
    %34 = vector.load %arg4[%c0_20, %c0_21] : memref<48x32xbf16, #tpu.memory_space<vmem>>, vector<48x32xbf16>
    %cst_22 = arith.constant dense<0.000000e+00> : vector<16x32xf32>
    %35 = tpu.matmul %23, %34, %cst_22 {dimension_numbers = #tpu.dot_dimension_numbers<[1], [0], [0], [1], [0, 0, 1, 1], [], []>} : vector<16x48xbf16>, vector<48x32xbf16>, vector<16x32xf32> -> vector<16x32xf32>
    %36 = arith.addf %33, %35 : vector<16x32xf32>
    %c0_23 = arith.constant 0 : index
    %c0_24 = arith.constant 0 : index
    %37 = vector.load %arg12[%c0_23, %c0_24] : memref<16x32xf32, #tpu.memory_space<vmem>>, vector<16x32xf32>
    tpu.vector_store %arg12[%c0_23, %c0_24], %36 {strides = array<i32>} : memref<16x32xf32, #tpu.memory_space<vmem>>, vector<16x32xf32>,
    %c0_25 = arith.constant 0 : index
    %c0_26 = arith.constant 0 : index
    %38 = vector.load %arg10[%c0_25, %c0_26] : memref<16x1xf32, #tpu.memory_space<vmem>>, vector<16x1xf32>
    tpu.vector_store %arg10[%c0_25, %c0_26], %17 {strides = array<i32>} : memref<16x1xf32, #tpu.memory_space<vmem>>, vector<16x1xf32>,
    %c0_i32_27 = arith.constant 0 : i32
    %39 = arith.cmpi eq, %arg1, %c0_i32_27 : i32
    %40 = arith.extui %39 : i1 to i32
    %c0_i32_28 = arith.constant 0 : i32
    %41 = arith.cmpi ne, %40, %c0_i32_28 : i32
    scf.if %41 {
      %c0_29 = arith.constant 0 : index
      %c0_30 = arith.constant 0 : index
      %42 = vector.load %arg11[%c0_29, %c0_30] : memref<16x4xf32, #tpu.memory_space<vmem>>, vector<16x4xf32>
      %cst_31 = arith.constant 1.000000e-30 : f32
      %43 = vector.broadcast %cst_31 : f32 to vector<16x4xf32>
      %44 = arith.maximumf %42, %43 : vector<16x4xf32>
      %45 = tpu.reciprocal %44 {approx = true} : vector<16x4xf32> -> vector<16x4xf32>
      %c0_32 = arith.constant 0 : index
      %c0_33 = arith.constant 0 : index
      %46 = vector.load %arg8[%c0_32, %c0_33] : memref<4x32xf32, #tpu.memory_space<vmem>>, vector<4x32xf32>
      %cst_34 = arith.constant dense<0.000000e+00> : vector<16x32xf32>
      %47 = tpu.matmul %45, %46, %cst_34 {dimension_numbers = #tpu.dot_dimension_numbers<[1], [0], [0], [1], [0, 0, 1, 1], [], []>} : vector<16x4xf32>, vector<4x32xf32>, vector<16x32xf32> -> vector<16x32xf32>
      %c0_35 = arith.constant 0 : index
      %c0_36 = arith.constant 0 : index
      %48 = vector.load %arg12[%c0_35, %c0_36] : memref<16x32xf32, #tpu.memory_space<vmem>>, vector<16x32xf32>
      %49 = arith.mulf %48, %47 : vector<16x32xf32>
      %c0_37 = arith.constant 0 : index
      %c0_38 = arith.constant 0 : index
      %50 = vector.load %arg6[%c0_37, %c0_38] : memref<16x1xf32, #tpu.memory_space<vmem>>, vector<16x1xf32>
      %51 = vector.broadcast %50 : vector<16x1xf32> to vector<16x32xf32>
      %52 = arith.mulf %49, %51 : vector<16x32xf32>
      %c0_39 = arith.constant 0 : index
      %c0_40 = arith.constant 0 : index
      %53 = vector.load %arg9[%c0_39, %c0_40] : memref<16x32xf32, #tpu.memory_space<vmem>>, vector<16x32xf32>
      tpu.vector_store %arg9[%c0_39, %c0_40], %52 {strides = array<i32>} : memref<16x32xf32, #tpu.memory_space<vmem>>, vector<16x32xf32>,
    } else {
    }
    return
  }
  func.func @transform_0(%arg0: i32, %arg1: i32) -> (i32, i32) {
    %c0_i32 = arith.constant 0 : i32
    %c0_i32_0 = arith.constant 0 : i32
    return %arg0, %c0_i32 : i32, i32
  }
  func.func @transform_1(%arg0: i32, %arg1: i32) -> (i32, i32) {
    %c0_i32 = arith.constant 0 : i32
    %c0_i32_0 = arith.constant 0 : i32
    return %c0_i32, %arg1 : i32, i32
  }
  func.func @transform_2(%arg0: i32, %arg1: i32) -> (i32, i32) {
    %c0_i32 = arith.constant 0 : i32
    %c0_i32_0 = arith.constant 0 : i32
    return %arg1, %c0_i32 : i32, i32
  }
  func.func @transform_3(%arg0: i32, %arg1: i32) -> (i32, i32) {
    %c0_i32 = arith.constant 0 : i32
    return %arg0, %arg1 : i32, i32
  }
  func.func @transform_4(%arg0: i32, %arg1: i32) -> (i32, i32) {
    %c0_i32 = arith.constant 0 : i32
    %c0_i32_0 = arith.constant 0 : i32
    return %arg0, %c0_i32 : i32, i32
  }
  func.func @transform_5(%arg0: i32, %arg1: i32) -> (i32, i32) {
    %c0_i32 = arith.constant 0 : i32
    %c0_i32_0 = arith.constant 0 : i32
    %c0_i32_1 = arith.constant 0 : i32
    return %c0_i32, %c0_i32_0 : i32, i32
  }
  func.func @transform_6(%arg0: i32, %arg1: i32) -> (i32, i32) {
    %c0_i32 = arith.constant 0 : i32
    %c0_i32_0 = arith.constant 0 : i32
    %c0_i32_1 = arith.constant 0 : i32
    return %c0_i32, %c0_i32_0 : i32, i32
  }
  func.func @transform_7(%arg0: i32, %arg1: i32) -> (i32, i32) {
    %c0_i32 = arith.constant 0 : i32
    %c0_i32_0 = arith.constant 0 : i32
    return %arg0, %c0_i32 : i32, i32
  }
}

module attributes {stable_mosaic.version = 11 : i64} {
  func.func @_matmul_kernel(%arg0: i32, %arg1: i32, %arg2: i32, %arg3: memref<16x32xbf16, #tpu.memory_space<vmem>>, %arg4: memref<32x32xbf16, #tpu.memory_space<vmem>>, %arg5: memref<1x32xf32, #tpu.memory_space<vmem>>, %arg6: memref<16x32xf32, #tpu.memory_space<vmem>>, %arg7: memref<16x32xf32, #tpu.memory_space<vmem>>) attributes {dimension_semantics = [#tpu.dimension_semantics<parallel>, #tpu.dimension_semantics<parallel>, #tpu.dimension_semantics<arbitrary>], iteration_bounds = array<i64: 1, 1, 1>, scalar_prefetch = 0 : i64, scratch_operands = 1 : i64, tpu.core_type = #tpu.core_type<tc>, window_params = [{transform_indices = @transform_0, window_bounds = array<i64: 16, 32>}, {transform_indices = @transform_1, window_bounds = array<i64: 32, 32>}, {transform_indices = @transform_2, window_bounds = array<i64: 1, 32>}, {transform_indices = @transform_3, window_bounds = array<i64: 16, 32>}]} {
    %c0_i32 = arith.constant 0 : i32
    %0 = arith.cmpi eq, %arg2, %c0_i32 : i32
    %1 = arith.extui %0 : i1 to i32
    %c0_i32_0 = arith.constant 0 : i32
    %2 = arith.cmpi ne, %1, %c0_i32_0 : i32
    scf.if %2 {
      %cst_10 = arith.constant 0.000000e+00 : f32
      %12 = vector.broadcast %cst_10 : f32 to vector<16x32xf32>
      %c0_11 = arith.constant 0 : index
      %c0_12 = arith.constant 0 : index
      %13 = vector.load %arg7[%c0_11, %c0_12] : memref<16x32xf32, #tpu.memory_space<vmem>>, vector<16x32xf32>
      tpu.vector_store %arg7[%c0_11, %c0_12], %12 {strides = array<i32>} : memref<16x32xf32, #tpu.memory_space<vmem>>, vector<16x32xf32>,
    } else {
    }
    %c0 = arith.constant 0 : index
    %c0_1 = arith.constant 0 : index
    %3 = vector.load %arg7[%c0, %c0_1] : memref<16x32xf32, #tpu.memory_space<vmem>>, vector<16x32xf32>
    %c0_2 = arith.constant 0 : index
    %c0_3 = arith.constant 0 : index
    %4 = vector.load %arg3[%c0_2, %c0_3] : memref<16x32xbf16, #tpu.memory_space<vmem>>, vector<16x32xbf16>
    %c0_4 = arith.constant 0 : index
    %c0_5 = arith.constant 0 : index
    %5 = vector.load %arg4[%c0_4, %c0_5] : memref<32x32xbf16, #tpu.memory_space<vmem>>, vector<32x32xbf16>
    %cst = arith.constant dense<0.000000e+00> : vector<16x32xf32>
    %6 = tpu.matmul %4, %5, %cst {dimension_numbers = #tpu.dot_dimension_numbers<[1], [0], [0], [1], [0, 0, 1, 1], [], []>} : vector<16x32xbf16>, vector<32x32xbf16>, vector<16x32xf32> -> vector<16x32xf32>
    %7 = arith.addf %3, %6 : vector<16x32xf32>
    %c0_6 = arith.constant 0 : index
    %c0_7 = arith.constant 0 : index
    %8 = vector.load %arg7[%c0_6, %c0_7] : memref<16x32xf32, #tpu.memory_space<vmem>>, vector<16x32xf32>
    tpu.vector_store %arg7[%c0_6, %c0_7], %7 {strides = array<i32>} : memref<16x32xf32, #tpu.memory_space<vmem>>, vector<16x32xf32>,
    %c0_i32_8 = arith.constant 0 : i32
    %9 = arith.cmpi eq, %arg2, %c0_i32_8 : i32
    %10 = arith.extui %9 : i1 to i32
    %c0_i32_9 = arith.constant 0 : i32
    %11 = arith.cmpi ne, %10, %c0_i32_9 : i32
    scf.if %11 {
      %c0_10 = arith.constant 0 : index
      %c0_11 = arith.constant 0 : index
      %12 = vector.load %arg7[%c0_10, %c0_11] : memref<16x32xf32, #tpu.memory_space<vmem>>, vector<16x32xf32>
      %c0_12 = arith.constant 0 : index
      %c0_13 = arith.constant 0 : index
      %13 = vector.load %arg5[%c0_12, %c0_13] : memref<1x32xf32, #tpu.memory_space<vmem>>, vector<1x32xf32>
      %14 = vector.broadcast %13 : vector<1x32xf32> to vector<16x32xf32>
      %15 = arith.addf %12, %14 : vector<16x32xf32>
      %c0_14 = arith.constant 0 : index
      %c0_15 = arith.constant 0 : index
      %16 = vector.load %arg6[%c0_14, %c0_15] : memref<16x32xf32, #tpu.memory_space<vmem>>, vector<16x32xf32>
      tpu.vector_store %arg6[%c0_14, %c0_15], %15 {strides = array<i32>} : memref<16x32xf32, #tpu.memory_space<vmem>>, vector<16x32xf32>,
    } else {
    }
    return
  }
  func.func @transform_0(%arg0: i32, %arg1: i32, %arg2: i32) -> (i32, i32) {
    %c0_i32 = arith.constant 0 : i32
    return %arg0, %arg2 : i32, i32
  }
  func.func @transform_1(%arg0: i32, %arg1: i32, %arg2: i32) -> (i32, i32) {
    %c0_i32 = arith.constant 0 : i32
    return %arg2, %arg1 : i32, i32
  }
  func.func @transform_2(%arg0: i32, %arg1: i32, %arg2: i32) -> (i32, i32) {
    %c0_i32 = arith.constant 0 : i32
    %c0_i32_0 = arith.constant 0 : i32
    return %c0_i32, %arg1 : i32, i32
  }
  func.func @transform_3(%arg0: i32, %arg1: i32, %arg2: i32) -> (i32, i32) {
    %c0_i32 = arith.constant 0 : i32
    return %arg0, %arg1 : i32, i32
  }
}

module attributes {stable_mosaic.version = 11 : i64} {
  func.func @_hgt_attn_kernel(%arg0: i32, %arg1: i32, %arg2: memref<12x32xbf16, #tpu.memory_space<vmem>>, %arg3: memref<32x64xbf16, #tpu.memory_space<vmem>>, %arg4: memref<64x32xbf16, #tpu.memory_space<vmem>>, %arg5: memref<12x16xi8, #tpu.memory_space<vmem>>, %arg6: memref<12x1xf32, #tpu.memory_space<vmem>>, %arg7: memref<64x4xbf16, #tpu.memory_space<vmem>>, %arg8: memref<4x32xf32, #tpu.memory_space<vmem>>, %arg9: memref<12x32xf32, #tpu.memory_space<vmem>>, %arg10: memref<12x1xf32, #tpu.memory_space<vmem>>, %arg11: memref<12x4xf32, #tpu.memory_space<vmem>>, %arg12: memref<12x32xf32, #tpu.memory_space<vmem>>) attributes {dimension_semantics = [#tpu.dimension_semantics<parallel>, #tpu.dimension_semantics<arbitrary>], iteration_bounds = array<i64: 1, 1>, scalar_prefetch = 0 : i64, scratch_operands = 3 : i64, tpu.core_type = #tpu.core_type<tc>, window_params = [{transform_indices = @transform_0, window_bounds = array<i64: 12, 32>}, {transform_indices = @transform_1, window_bounds = array<i64: 32, 64>}, {transform_indices = @transform_2, window_bounds = array<i64: 64, 32>}, {transform_indices = @transform_3, window_bounds = array<i64: 12, 16>}, {transform_indices = @transform_4, window_bounds = array<i64: 12, 1>}, {pipeline_mode = #tpu.pipeline_mode<synchronous>, transform_indices = @transform_5, window_bounds = array<i64: 64, 4>}, {pipeline_mode = #tpu.pipeline_mode<synchronous>, transform_indices = @transform_6, window_bounds = array<i64: 4, 32>}, {transform_indices = @transform_7, window_bounds = array<i64: 12, 32>}]} {
    %c0_i32 = arith.constant 0 : i32
    %0 = arith.cmpi eq, %arg1, %c0_i32 : i32
    %1 = arith.extui %0 : i1 to i32
    %c0_i32_0 = arith.constant 0 : i32
    %2 = arith.cmpi ne, %1, %c0_i32_0 : i32
    scf.if %2 {
      %cst_29 = arith.constant -1.000000e+30 : f32
      %42 = vector.broadcast %cst_29 : f32 to vector<12x1xf32>
      %c0_30 = arith.constant 0 : index
      %c0_31 = arith.constant 0 : index
      %43 = vector.load %arg10[%c0_30, %c0_31] : memref<12x1xf32, #tpu.memory_space<vmem>>, vector<12x1xf32>
      tpu.vector_store %arg10[%c0_30, %c0_31], %42 {strides = array<i32>} : memref<12x1xf32, #tpu.memory_space<vmem>>, vector<12x1xf32>,
      %cst_32 = arith.constant 0.000000e+00 : f32
      %44 = vector.broadcast %cst_32 : f32 to vector<12x4xf32>
      %c0_33 = arith.constant 0 : index
      %c0_34 = arith.constant 0 : index
      %45 = vector.load %arg11[%c0_33, %c0_34] : memref<12x4xf32, #tpu.memory_space<vmem>>, vector<12x4xf32>
      tpu.vector_store %arg11[%c0_33, %c0_34], %44 {strides = array<i32>} : memref<12x4xf32, #tpu.memory_space<vmem>>, vector<12x4xf32>,
      %cst_35 = arith.constant 0.000000e+00 : f32
      %46 = vector.broadcast %cst_35 : f32 to vector<12x32xf32>
      %c0_36 = arith.constant 0 : index
      %c0_37 = arith.constant 0 : index
      %47 = vector.load %arg12[%c0_36, %c0_37] : memref<12x32xf32, #tpu.memory_space<vmem>>, vector<12x32xf32>
      tpu.vector_store %arg12[%c0_36, %c0_37], %46 {strides = array<i32>} : memref<12x32xf32, #tpu.memory_space<vmem>>, vector<12x32xf32>,
    } else {
    }
    %c0 = arith.constant 0 : index
    %c0_1 = arith.constant 0 : index
    %3 = vector.load %arg2[%c0, %c0_1] : memref<12x32xbf16, #tpu.memory_space<vmem>>, vector<12x32xbf16>
    %c0_2 = arith.constant 0 : index
    %c0_3 = arith.constant 0 : index
    %4 = vector.load %arg3[%c0_2, %c0_3] : memref<32x64xbf16, #tpu.memory_space<vmem>>, vector<32x64xbf16>
    %cst = arith.constant dense<0.000000e+00> : vector<12x64xf32>
    %5 = tpu.matmul %3, %4, %cst {dimension_numbers = #tpu.dot_dimension_numbers<[1], [0], [0], [1], [0, 0, 1, 1], [], []>} : vector<12x32xbf16>, vector<32x64xbf16>, vector<12x64xf32> -> vector<12x64xf32>
    %c0_4 = arith.constant 0 : index
    %c0_5 = arith.constant 0 : index
    %6 = vector.load %arg5[%c0_4, %c0_5] : memref<12x16xi8, #tpu.memory_space<vmem>>, vector<12x16xi8>
    %7 = arith.sitofp %6 : vector<12x16xi8> to vector<12x16xf32>
    %cst_6 = arith.constant 1.000000e+00 : f32
    %8 = vector.broadcast %cst_6 : f32 to vector<12x16xf32>
    %9 = arith.subf %7, %8 : vector<12x16xf32>
    %cst_7 = arith.constant 1.000000e+30 : f32
    %10 = vector.broadcast %cst_7 : f32 to vector<12x16xf32>
    %11 = arith.mulf %9, %10 : vector<12x16xf32>
    %12 = tpu.concatenate %11, %11, %11, %11 in 1 : vector<12x16xf32>, vector<12x16xf32>, vector<12x16xf32>, vector<12x16xf32> -> vector<12x64xf32>
    %13 = arith.addf %5, %12 : vector<12x64xf32>
    %c0_8 = arith.constant 0 : index
    %c0_9 = arith.constant 0 : index
    %14 = vector.load %arg10[%c0_8, %c0_9] : memref<12x1xf32, #tpu.memory_space<vmem>>, vector<12x1xf32>
    %cst_10 = arith.constant dense<0xFF800000> : vector<12xf32>
    %15 = vector.multi_reduction <maximumf>, %13, %cst_10 [1] : vector<12x64xf32> to vector<12xf32>
    %16 = vector.shape_cast %15 : vector<12xf32> to vector<12x1xf32>
    %17 = arith.maximumf %14, %16 : vector<12x1xf32>
    %18 = arith.subf %14, %17 : vector<12x1xf32>
    %19 = math.exp %18 : vector<12x1xf32>
    %20 = vector.broadcast %17 : vector<12x1xf32> to vector<12x64xf32>
    %21 = arith.subf %13, %20 : vector<12x64xf32>
    %22 = math.exp %21 : vector<12x64xf32>
    %23 = arith.truncf %22 : vector<12x64xf32> to vector<12x64xbf16>
    %c0_11 = arith.constant 0 : index
    %c0_12 = arith.constant 0 : index
    %24 = vector.load %arg11[%c0_11, %c0_12] : memref<12x4xf32, #tpu.memory_space<vmem>>, vector<12x4xf32>
    %25 = vector.broadcast %19 : vector<12x1xf32> to vector<12x4xf32>
    %26 = arith.mulf %25, %24 : vector<12x4xf32>
    %c0_13 = arith.constant 0 : index
    %c0_14 = arith.constant 0 : index
    %27 = vector.load %arg7[%c0_13, %c0_14] : memref<64x4xbf16, #tpu.memory_space<vmem>>, vector<64x4xbf16>
    %cst_15 = arith.constant dense<0.000000e+00> : vector<12x4xf32>
    %28 = tpu.matmul %23, %27, %cst_15 {dimension_numbers = #tpu.dot_dimension_numbers<[1], [0], [0], [1], [0, 0, 1, 1], [], []>} : vector<12x64xbf16>, vector<64x4xbf16>, vector<12x4xf32> -> vector<12x4xf32>
    %29 = arith.addf %26, %28 : vector<12x4xf32>
    %c0_16 = arith.constant 0 : index
    %c0_17 = arith.constant 0 : index
    %30 = vector.load %arg11[%c0_16, %c0_17] : memref<12x4xf32, #tpu.memory_space<vmem>>, vector<12x4xf32>
    tpu.vector_store %arg11[%c0_16, %c0_17], %29 {strides = array<i32>} : memref<12x4xf32, #tpu.memory_space<vmem>>, vector<12x4xf32>,
    %c0_18 = arith.constant 0 : index
    %c0_19 = arith.constant 0 : index
    %31 = vector.load %arg12[%c0_18, %c0_19] : memref<12x32xf32, #tpu.memory_space<vmem>>, vector<12x32xf32>
    %32 = vector.broadcast %19 : vector<12x1xf32> to vector<12x32xf32>
    %33 = arith.mulf %32, %31 : vector<12x32xf32>
    %c0_20 = arith.constant 0 : index
    %c0_21 = arith.constant 0 : index
    %34 = vector.load %arg4[%c0_20, %c0_21] : memref<64x32xbf16, #tpu.memory_space<vmem>>, vector<64x32xbf16>
    %cst_22 = arith.constant dense<0.000000e+00> : vector<12x32xf32>
    %35 = tpu.matmul %23, %34, %cst_22 {dimension_numbers = #tpu.dot_dimension_numbers<[1], [0], [0], [1], [0, 0, 1, 1], [], []>} : vector<12x64xbf16>, vector<64x32xbf16>, vector<12x32xf32> -> vector<12x32xf32>
    %36 = arith.addf %33, %35 : vector<12x32xf32>
    %c0_23 = arith.constant 0 : index
    %c0_24 = arith.constant 0 : index
    %37 = vector.load %arg12[%c0_23, %c0_24] : memref<12x32xf32, #tpu.memory_space<vmem>>, vector<12x32xf32>
    tpu.vector_store %arg12[%c0_23, %c0_24], %36 {strides = array<i32>} : memref<12x32xf32, #tpu.memory_space<vmem>>, vector<12x32xf32>,
    %c0_25 = arith.constant 0 : index
    %c0_26 = arith.constant 0 : index
    %38 = vector.load %arg10[%c0_25, %c0_26] : memref<12x1xf32, #tpu.memory_space<vmem>>, vector<12x1xf32>
    tpu.vector_store %arg10[%c0_25, %c0_26], %17 {strides = array<i32>} : memref<12x1xf32, #tpu.memory_space<vmem>>, vector<12x1xf32>,
    %c0_i32_27 = arith.constant 0 : i32
    %39 = arith.cmpi eq, %arg1, %c0_i32_27 : i32
    %40 = arith.extui %39 : i1 to i32
    %c0_i32_28 = arith.constant 0 : i32
    %41 = arith.cmpi ne, %40, %c0_i32_28 : i32
    scf.if %41 {
      %c0_29 = arith.constant 0 : index
      %c0_30 = arith.constant 0 : index
      %42 = vector.load %arg11[%c0_29, %c0_30] : memref<12x4xf32, #tpu.memory_space<vmem>>, vector<12x4xf32>
      %cst_31 = arith.constant 1.000000e-30 : f32
      %43 = vector.broadcast %cst_31 : f32 to vector<12x4xf32>
      %44 = arith.maximumf %42, %43 : vector<12x4xf32>
      %45 = tpu.reciprocal %44 {approx = true} : vector<12x4xf32> -> vector<12x4xf32>
      %c0_32 = arith.constant 0 : index
      %c0_33 = arith.constant 0 : index
      %46 = vector.load %arg8[%c0_32, %c0_33] : memref<4x32xf32, #tpu.memory_space<vmem>>, vector<4x32xf32>
      %cst_34 = arith.constant dense<0.000000e+00> : vector<12x32xf32>
      %47 = tpu.matmul %45, %46, %cst_34 {dimension_numbers = #tpu.dot_dimension_numbers<[1], [0], [0], [1], [0, 0, 1, 1], [], []>} : vector<12x4xf32>, vector<4x32xf32>, vector<12x32xf32> -> vector<12x32xf32>
      %c0_35 = arith.constant 0 : index
      %c0_36 = arith.constant 0 : index
      %48 = vector.load %arg12[%c0_35, %c0_36] : memref<12x32xf32, #tpu.memory_space<vmem>>, vector<12x32xf32>
      %49 = arith.mulf %48, %47 : vector<12x32xf32>
      %c0_37 = arith.constant 0 : index
      %c0_38 = arith.constant 0 : index
      %50 = vector.load %arg6[%c0_37, %c0_38] : memref<12x1xf32, #tpu.memory_space<vmem>>, vector<12x1xf32>
      %51 = vector.broadcast %50 : vector<12x1xf32> to vector<12x32xf32>
      %52 = arith.mulf %49, %51 : vector<12x32xf32>
      %c0_39 = arith.constant 0 : index
      %c0_40 = arith.constant 0 : index
      %53 = vector.load %arg9[%c0_39, %c0_40] : memref<12x32xf32, #tpu.memory_space<vmem>>, vector<12x32xf32>
      tpu.vector_store %arg9[%c0_39, %c0_40], %52 {strides = array<i32>} : memref<12x32xf32, #tpu.memory_space<vmem>>, vector<12x32xf32>,
    } else {
    }
    return
  }
  func.func @transform_0(%arg0: i32, %arg1: i32) -> (i32, i32) {
    %c0_i32 = arith.constant 0 : i32
    %c0_i32_0 = arith.constant 0 : i32
    return %arg0, %c0_i32 : i32, i32
  }
  func.func @transform_1(%arg0: i32, %arg1: i32) -> (i32, i32) {
    %c0_i32 = arith.constant 0 : i32
    %c0_i32_0 = arith.constant 0 : i32
    return %c0_i32, %arg1 : i32, i32
  }
  func.func @transform_2(%arg0: i32, %arg1: i32) -> (i32, i32) {
    %c0_i32 = arith.constant 0 : i32
    %c0_i32_0 = arith.constant 0 : i32
    return %arg1, %c0_i32 : i32, i32
  }
  func.func @transform_3(%arg0: i32, %arg1: i32) -> (i32, i32) {
    %c0_i32 = arith.constant 0 : i32
    return %arg0, %arg1 : i32, i32
  }
  func.func @transform_4(%arg0: i32, %arg1: i32) -> (i32, i32) {
    %c0_i32 = arith.constant 0 : i32
    %c0_i32_0 = arith.constant 0 : i32
    return %arg0, %c0_i32 : i32, i32
  }
  func.func @transform_5(%arg0: i32, %arg1: i32) -> (i32, i32) {
    %c0_i32 = arith.constant 0 : i32
    %c0_i32_0 = arith.constant 0 : i32
    %c0_i32_1 = arith.constant 0 : i32
    return %c0_i32, %c0_i32_0 : i32, i32
  }
  func.func @transform_6(%arg0: i32, %arg1: i32) -> (i32, i32) {
    %c0_i32 = arith.constant 0 : i32
    %c0_i32_0 = arith.constant 0 : i32
    %c0_i32_1 = arith.constant 0 : i32
    return %c0_i32, %c0_i32_0 : i32, i32
  }
  func.func @transform_7(%arg0: i32, %arg1: i32) -> (i32, i32) {
    %c0_i32 = arith.constant 0 : i32
    %c0_i32_0 = arith.constant 0 : i32
    return %arg0, %c0_i32 : i32, i32
  }
}

module attributes {stable_mosaic.version = 11 : i64} {
  func.func @_matmul_kernel(%arg0: i32, %arg1: i32, %arg2: i32, %arg3: memref<12x32xbf16, #tpu.memory_space<vmem>>, %arg4: memref<32x32xbf16, #tpu.memory_space<vmem>>, %arg5: memref<1x32xf32, #tpu.memory_space<vmem>>, %arg6: memref<12x32xf32, #tpu.memory_space<vmem>>, %arg7: memref<12x32xf32, #tpu.memory_space<vmem>>) attributes {dimension_semantics = [#tpu.dimension_semantics<parallel>, #tpu.dimension_semantics<parallel>, #tpu.dimension_semantics<arbitrary>], iteration_bounds = array<i64: 1, 1, 1>, scalar_prefetch = 0 : i64, scratch_operands = 1 : i64, tpu.core_type = #tpu.core_type<tc>, window_params = [{transform_indices = @transform_0, window_bounds = array<i64: 12, 32>}, {transform_indices = @transform_1, window_bounds = array<i64: 32, 32>}, {transform_indices = @transform_2, window_bounds = array<i64: 1, 32>}, {transform_indices = @transform_3, window_bounds = array<i64: 12, 32>}]} {
    %c0_i32 = arith.constant 0 : i32
    %0 = arith.cmpi eq, %arg2, %c0_i32 : i32
    %1 = arith.extui %0 : i1 to i32
    %c0_i32_0 = arith.constant 0 : i32
    %2 = arith.cmpi ne, %1, %c0_i32_0 : i32
    scf.if %2 {
      %cst_10 = arith.constant 0.000000e+00 : f32
      %12 = vector.broadcast %cst_10 : f32 to vector<12x32xf32>
      %c0_11 = arith.constant 0 : index
      %c0_12 = arith.constant 0 : index
      %13 = vector.load %arg7[%c0_11, %c0_12] : memref<12x32xf32, #tpu.memory_space<vmem>>, vector<12x32xf32>
      tpu.vector_store %arg7[%c0_11, %c0_12], %12 {strides = array<i32>} : memref<12x32xf32, #tpu.memory_space<vmem>>, vector<12x32xf32>,
    } else {
    }
    %c0 = arith.constant 0 : index
    %c0_1 = arith.constant 0 : index
    %3 = vector.load %arg7[%c0, %c0_1] : memref<12x32xf32, #tpu.memory_space<vmem>>, vector<12x32xf32>
    %c0_2 = arith.constant 0 : index
    %c0_3 = arith.constant 0 : index
    %4 = vector.load %arg3[%c0_2, %c0_3] : memref<12x32xbf16, #tpu.memory_space<vmem>>, vector<12x32xbf16>
    %c0_4 = arith.constant 0 : index
    %c0_5 = arith.constant 0 : index
    %5 = vector.load %arg4[%c0_4, %c0_5] : memref<32x32xbf16, #tpu.memory_space<vmem>>, vector<32x32xbf16>
    %cst = arith.constant dense<0.000000e+00> : vector<12x32xf32>
    %6 = tpu.matmul %4, %5, %cst {dimension_numbers = #tpu.dot_dimension_numbers<[1], [0], [0], [1], [0, 0, 1, 1], [], []>} : vector<12x32xbf16>, vector<32x32xbf16>, vector<12x32xf32> -> vector<12x32xf32>
    %7 = arith.addf %3, %6 : vector<12x32xf32>
    %c0_6 = arith.constant 0 : index
    %c0_7 = arith.constant 0 : index
    %8 = vector.load %arg7[%c0_6, %c0_7] : memref<12x32xf32, #tpu.memory_space<vmem>>, vector<12x32xf32>
    tpu.vector_store %arg7[%c0_6, %c0_7], %7 {strides = array<i32>} : memref<12x32xf32, #tpu.memory_space<vmem>>, vector<12x32xf32>,
    %c0_i32_8 = arith.constant 0 : i32
    %9 = arith.cmpi eq, %arg2, %c0_i32_8 : i32
    %10 = arith.extui %9 : i1 to i32
    %c0_i32_9 = arith.constant 0 : i32
    %11 = arith.cmpi ne, %10, %c0_i32_9 : i32
    scf.if %11 {
      %c0_10 = arith.constant 0 : index
      %c0_11 = arith.constant 0 : index
      %12 = vector.load %arg7[%c0_10, %c0_11] : memref<12x32xf32, #tpu.memory_space<vmem>>, vector<12x32xf32>
      %c0_12 = arith.constant 0 : index
      %c0_13 = arith.constant 0 : index
      %13 = vector.load %arg5[%c0_12, %c0_13] : memref<1x32xf32, #tpu.memory_space<vmem>>, vector<1x32xf32>
      %14 = vector.broadcast %13 : vector<1x32xf32> to vector<12x32xf32>
      %15 = arith.addf %12, %14 : vector<12x32xf32>
      %c0_14 = arith.constant 0 : index
      %c0_15 = arith.constant 0 : index
      %16 = vector.load %arg6[%c0_14, %c0_15] : memref<12x32xf32, #tpu.memory_space<vmem>>, vector<12x32xf32>
      tpu.vector_store %arg6[%c0_14, %c0_15], %15 {strides = array<i32>} : memref<12x32xf32, #tpu.memory_space<vmem>>, vector<12x32xf32>,
    } else {
    }
    return
  }
  func.func @transform_0(%arg0: i32, %arg1: i32, %arg2: i32) -> (i32, i32) {
    %c0_i32 = arith.constant 0 : i32
    return %arg0, %arg2 : i32, i32
  }
  func.func @transform_1(%arg0: i32, %arg1: i32, %arg2: i32) -> (i32, i32) {
    %c0_i32 = arith.constant 0 : i32
    return %arg2, %arg1 : i32, i32
  }
  func.func @transform_2(%arg0: i32, %arg1: i32, %arg2: i32) -> (i32, i32) {
    %c0_i32 = arith.constant 0 : i32
    %c0_i32_0 = arith.constant 0 : i32
    return %c0_i32, %arg1 : i32, i32
  }
  func.func @transform_3(%arg0: i32, %arg1: i32, %arg2: i32) -> (i32, i32) {
    %c0_i32 = arith.constant 0 : i32
    return %arg0, %arg1 : i32, i32
  }
}

module attributes {stable_mosaic.version = 11 : i64} {
  func.func @_pair_score_kernel(%arg0: i32, %arg1: memref<64x10xf32, #tpu.memory_space<vmem>>, %arg2: memref<64x10xf32, #tpu.memory_space<vmem>>, %arg3: memref<1x10xf32, #tpu.memory_space<vmem>>) attributes {dimension_semantics = [#tpu.dimension_semantics<parallel>], iteration_bounds = array<i64: 1>, scalar_prefetch = 0 : i64, scratch_operands = 0 : i64, tpu.core_type = #tpu.core_type<tc>, window_params = [{transform_indices = @transform_0, window_bounds = array<i64: 64, 10>}, {transform_indices = @transform_1, window_bounds = array<i64: 64, 10>}, {transform_indices = @transform_2, window_bounds = array<i64: 1, 10>}]} {
    %c0 = arith.constant 0 : index
    %c0_0 = arith.constant 0 : index
    %0 = vector.load %arg1[%c0, %c0_0] : memref<64x10xf32, #tpu.memory_space<vmem>>, vector<64x10xf32>
    %c0_1 = arith.constant 0 : index
    %c0_2 = arith.constant 0 : index
    %1 = vector.load %arg2[%c0_1, %c0_2] : memref<64x10xf32, #tpu.memory_space<vmem>>, vector<64x10xf32>
    %2 = arith.mulf %0, %1 : vector<64x10xf32>
    %cst = arith.constant dense<0.000000e+00> : vector<10xf32>
    %3 = vector.multi_reduction <add>, %2, %cst [0] : vector<64x10xf32> to vector<10xf32>
    %4 = vector.shape_cast %3 : vector<10xf32> to vector<1x10xf32>
    %c0_3 = arith.constant 0 : index
    %c0_4 = arith.constant 0 : index
    %5 = vector.load %arg3[%c0_3, %c0_4] : memref<1x10xf32, #tpu.memory_space<vmem>>, vector<1x10xf32>
    tpu.vector_store %arg3[%c0_3, %c0_4], %4 {strides = array<i32>} : memref<1x10xf32, #tpu.memory_space<vmem>>, vector<1x10xf32>,
    return
  }
  func.func @transform_0(%arg0: i32) -> (i32, i32) {
    %c0_i32 = arith.constant 0 : i32
    %c0_i32_0 = arith.constant 0 : i32
    return %c0_i32, %arg0 : i32, i32
  }
  func.func @transform_1(%arg0: i32) -> (i32, i32) {
    %c0_i32 = arith.constant 0 : i32
    %c0_i32_0 = arith.constant 0 : i32
    return %c0_i32, %arg0 : i32, i32
  }
  func.func @transform_2(%arg0: i32) -> (i32, i32) {
    %c0_i32 = arith.constant 0 : i32
    %c0_i32_0 = arith.constant 0 : i32
    return %c0_i32, %arg0 : i32, i32
  }
}

</mosaic_0001>

<bundles_post_ra>
// kernel: mul.126
= control target key start
LH: loop header
LB: loop body
LE: loop exit
PB: predicated region body
PF: predicated region fallthrough
CT: control target
= control target key end

     0   :  { %vm22_vm0 = vcmask 64512   ;;  %s59_s14 = smov 8   ;;  %s60_s15 = smov 16   ;;  %vm28_vm1 = vcmask 261312   ;;  %vm34_vm2 = vcmask 195712   ;;  %vm40_vm3 = vcmask 130112   ;;  %s86_s0 = inlined_call_operand.vmem [shape: f32[4,4,8], index: 0, kind: input, shape index: {}]   ;;  %s87_s1 = inlined_call_operand.vmem [shape: f32[4,32], index: 1, kind: output, shape index: {}]  }
   0x1   :  { %v52_v0 = vld [vmem:[%s86_s0 + $0xc] sm:$0xf]  ;;  %v53_v1 = vld [vmem:[%s86_s0 + $0x8] sm:$0xf]  ;;  %v54_v2 = vld [vmem:[%s86_s0 + $0x4] sm:$0xf] }
   0x2   :  { %9 = vst [vmem:[#allocation1 + $0x18] sm:$0xf] %v52_v0  ;;  %14 = vst [vmem:[#allocation1 + $0x10] sm:$0xf] %v53_v1  ;;  %v19_v3 = vld [vmem:[%s86_s0] sm:$0xf] }
   0x3   :  { %18 = vst [vmem:[#allocation1 + $0x8] sm:$0xf] %v54_v2  ;;  %20 = vst [vmem:[#allocation1] sm:$0xf] %v19_v3  ;;  %s58_s0 = smov 24  }
   0xa   :  { %v25_v4 = vld [vmem:[#allocation1 + $0x3] ss:$8 sm:$0xf]   ;;  %v37_v5 = vld [vmem:[#allocation1 + $0x1] ss:$8 sm:$0xf]  }
   0xb   :  { %26 = vrot.lane.b32.xlu0 %v25_v4, %s58_s0  ;;  %v21_v6 = vld [vmem:[#allocation1] ss:$8 sm:$0xf]   ;;  %v31_v7 = vld [vmem:[#allocation1 + $0x2] ss:$8 sm:$0xf]   ;;  %38 = vrot.lane.b32.xlu1 %v37_v5, %s59_s14 }
   0xc   :  { %23 = vst.msk [vmem:[#allocation0] sm:$0xf] %vm22_vm0, %v21_v6  }
   0xf   :  { %32 = vrot.lane.b32.xlu0 %v31_v7, %s60_s15 }
  0x7d   :  { %v27_v8 = vpop.permute.xlu0 %26   ;;  %v39_v9 = vpop.permute.xlu1 %38  }
  0x7e   :  { %29 = vst.msk [vmem:[#allocation0] sm:$0xf] %vm28_vm1, %v27_v8  }
  0x81   :  { %v33_v10 = vpop.permute.xlu0 %32  }
  0x82   :  { %35 = vst.msk [vmem:[#allocation0] sm:$0xf] %vm34_vm2, %v33_v10  }
  0x83   :  { %41 = vst.msk [vmem:[#allocation0] sm:$0xf] %vm40_vm3, %v39_v9  }
  0x8a   :  { %v46_v11 = vld [vmem:[#allocation0] sm:$0xf] }
  0x8b   :  { %49 = vst [vmem:[%s87_s1] sm:$0xf] %v46_v11 }

// kernel: hgt_old_forward.18
= control target key start
LH: loop header
LB: loop body
LE: loop exit
PB: predicated region body
PF: predicated region fallthrough
CT: control target
= control target key end

     0   :  { %v136_v0 = vmov 0.0   ;;  %vm137_vm0 = vmmov 0   ;;  %vm46_vm1 = vcmask 261120   ;;  %s176_s1 = inlined_call_operand.vmem [shape: bf16[32,128], index: 1, kind: input, shape index: {}]   ;;  %s177_s0 = inlined_call_operand.vmem [shape: bf16[12,32], index: 0, kind: input, shape index: {}]   ;;  %s178_s2 = inlined_call_operand.vmem [shape: f32[1,128], index: 2, kind: input, shape index: {}]   ;;  %s179_s3 = inlined_call_operand.vmem [shape: f32[12,128], index: 3, kind: output, shape index: {}]  }
   0x1   :  { %123 = vmatprep.subr.bf16.mxu0 %v136_v0  ;;  %20 = vst [vmem:[#allocation2 + $0x8] sm:$0xf] %v136_v0  ;;  %v133_v1 = vld [vmem:[%s176_s1 + $0x8] sm:$0xff]   ;;  %127 = vmatprep.mubr.msk.bf16.mxu0 %vm137_vm0, %v136_v0  ;;  %v134_v2 = vld [vmem:[%s176_s1] sm:$0xff]  }
   0x2   :  { %124 = vmatpush3.bf16.msra.mxu0 %v133_v1  ;;  %v135_v3 = vld [vmem:[%s177_s0] sm:$0x3f]  }
   0x3   :  { %125 = vmatprep.subr.bf16.mxu0 %v136_v0  ;;  %v119_v5 = vld [vmem:[%s178_s2] ss:$0 sm:$0xff] }
   0x6   :  { %126 = vmatpush3.bf16.msra.mxu0 %v134_v2 }
   0x8   :  { %v22_v7 = vld [vmem:[#allocation2 + $0x8] sm:$0xf] }
   0x9   :  { %128 = vmatmul.mubr.msk.bf16.vlgmr.msra.gmra.mxu0 %vm46_vm1, %v135_v3 }
  0xc9   :  { %v84_v4 = vpop.f32.mrf.mxu0 }
  0xca   :  { %v107_v8 = vadd.f32 %v119_v5, %v84_v4 }
  0xcb   :  { %v129_v6 = vpop.f32.mrf.mxu0 }
  0xcc   :  { %109 = vst [vmem:[%s179_s3] sm:$0xff] %v107_v8 }
  0xcd   :  { %v87_v9 = vpop.f32.mrf.mxu0 }
  0xce   :  { %v92_v10 = vadd.f32 %v87_v9, %v22_v7 }
  0xcf   :  { %v130_v11 = vpop.f32.mrf.mxu0 }
  0xd0   :  { %94 = vst [vmem:[#allocation2 + $0x8] sm:$0xf] %v92_v10 }
  0xd7   :  { %v99_v12 = vld [vmem:[#allocation2 + $0x8] sm:$0xf] }
  0xd8   :  { %v108_v13 = vadd.f32 %v119_v5, %v99_v12 }
  0xda   :  { %110 = vst [vmem:[%s179_s3 + $0x8] sm:$0xf] %v108_v13 }

// kernel: hgt_old_forward.16
= control target key start
LH: loop header
LB: loop body
LE: loop exit
PB: predicated region body
PF: predicated region fallthrough
CT: control target
= control target key end

     0   :  { %vm19_vm0 = vcmask 261120   ;;  %vm21_vm1 = vcmask 257024   ;;  %vm43_vm2 = vcmask 1044480   ;;  %v132_v0 = vmov 0.0   ;;  %s175_s1 = inlined_call_operand.vmem [shape: bf16[10,32], index: 1, kind: input, shape index: {}]   ;;  %s176_s0 = inlined_call_operand.vmem [shape: bf16[12,10], index: 0, kind: input, shape index: {}]   ;;  %s177_s2 = inlined_call_operand.vmem [shape: f32[1,32], index: 2, kind: input, shape index: {}]   ;;  %s178_s3 = inlined_call_operand.vmem [shape: f32[12,32], index: 3, kind: output, shape index: {}]  }
   0x1   :  { %20 = vst.msk [vmem:[#allocation2] sm:$0xff] %vm19_vm0, %v132_v0  ;;  %122 = vmatprep.subr.bf16.mxu0 %v132_v0  ;;  %v130_v1 = vld [vmem:[%s175_s1] sm:$0x1f]   ;;  %vm133_vm3 = vmmov 0   ;;  %vm39_vm4 = vcmask 80896  }
   0x2   :  { %22 = vst.msk [vmem:[#allocation2 + $0x8] sm:$0xf] %vm21_vm1, %v132_v0  ;;  %v45_v2 = vsel %vm43_vm2, %v130_v1, 0  ;;  %124 = vmatprep.mubr.msk.bf16.mxu0 %vm133_vm3, %v132_v0  ;;  %v131_v3 = vld [vmem:[%s176_s0] sm:$0x3f]  }
   0x3   :  { %123 = vmatpush3.bf16.msra.mxu0 %v45_v2  ;;  %v119_v12 = vld [vmem:[%s177_s2] ss:$0 sm:$0xff] }
   0x6   :  { %125 = vmatmul.mubr.msk.bf16.vlgmr.msra.gmra.mxu0 %vm39_vm4, %v131_v3 }
   0x8   :  { %v23_v4 = vld [vmem:[#allocation2] sm:$0xff] }
   0x9   :  { %v24_v8 = vld [vmem:[#allocation2 + $0x8] sm:$0xf] }
  0xc6   :  { %v81_v5 = vpop.f32.mrf.mxu0 }
  0xc7   :  { %v88_v6 = vadd.f32 %v81_v5, %v23_v4 }
  0xc8   :  { %v126_v7 = vpop.f32.mrf.mxu0 }
  0xc9   :  { %91 = vst.msk [vmem:[#allocation2] sm:$0xff] %vm19_vm0, %v88_v6 }
  0xca   :  { %v84_v9 = vpop.f32.mrf.mxu0 }
  0xcb   :  { %v89_v10 = vadd.f32 %v84_v9, %v24_v8 }
  0xcc   :  { %v127_v11 = vpop.f32.mrf.mxu0 }
  0xcd   :  { %93 = vst.msk [vmem:[#allocation2 + $0x8] sm:$0xf] %vm21_vm1, %v89_v10 }
  0xd0   :  { %v97_v13 = vld [vmem:[#allocation2] sm:$0xff] }
  0xd1   :  { %v106_v14 = vadd.f32 %v119_v12, %v97_v13 }
  0xd3   :  { %v108_v15 = vmax.f32 %v106_v14, 0.0 }
  0xd4   :  { %v98_v16 = vld [vmem:[#allocation2 + $0x8] sm:$0xf] }
  0xd5   :  { %110 = vst.msk [vmem:[%s178_s3] sm:$0xff] %vm19_vm0, %v108_v15  ;;  %v107_v17 = vadd.f32 %v119_v12, %v98_v16 }
  0xd7   :  { %v109_v18 = vmax.f32 %v107_v17, 0.0 }
  0xd9   :  { %111 = vst.msk [vmem:[%s178_s3 + $0x8] sm:$0xf] %vm21_vm1, %v109_v18 }

// kernel: hgt_old_forward.15
= control target key start
LH: loop header
LB: loop body
LE: loop exit
PB: predicated region body
PF: predicated region fallthrough
CT: control target
= control target key end

     0   :  { %vm19_vm0 = vcmask 261120   ;;  %vm36_vm1 = vcmask 1043456   ;;  %v122_v0 = vmov 0.0   ;;  %vm123_vm2 = vmmov 0   ;;  %s165_s1 = inlined_call_operand.vmem [shape: bf16[8,32], index: 1, kind: input, shape index: {}]   ;;  %s166_s0 = inlined_call_operand.vmem [shape: bf16[16,8], index: 0, kind: input, shape index: {}]   ;;  %s167_s2 = inlined_call_operand.vmem [shape: f32[1,32], index: 2, kind: input, shape index: {}]   ;;  %s168_s3 = inlined_call_operand.vmem [shape: f32[16,32], index: 3, kind: output, shape index: {}]  }
   0x1   :  { %20 = vst.msk [vmem:[#allocation2] sm:$0xff] %vm19_vm0, %v122_v0  ;;  %21 = vst.msk [vmem:[#allocation2 + $0x8] sm:$0xff] %vm19_vm0, %v122_v0  ;;  %113 = vmatprep.subr.bf16.mxu0 %v122_v0  ;;  %v26_v1 = vld [vmem:[%s165_s1] sm:$0xf]  ;;  %115 = vmatprep.mubr.msk.bf16.mxu0 %vm123_vm2, %v122_v0  ;;  %vm32_vm3 = vcmask 64512  }
   0x2   :  { %v38_v2 = vsel %vm36_vm1, %v26_v1, 0  ;;  %v121_v3 = vld [vmem:[%s166_s0] sm:$0xff]  }
   0x3   :  { %114 = vmatpush3.bf16.msra.mxu0 %v38_v2  ;;  %v110_v12 = vld [vmem:[%s167_s2] ss:$0 sm:$0xff] }
   0x6   :  { %116 = vmatmul.mubr.msk.bf16.vlgmr.msra.gmra.mxu0 %vm32_vm3, %v121_v3 }
   0x8   :  { %v22_v4 = vld [vmem:[#allocation2] sm:$0xff]  ;;  %v23_v8 = vld [vmem:[#allocation2 + $0x8] sm:$0xff] }
  0xc6   :  { %v74_v5 = vpop.f32.mrf.mxu0 }
  0xc7   :  { %v81_v6 = vadd.f32 %v74_v5, %v22_v4 }
  0xc8   :  { %v117_v7 = vpop.f32.mrf.mxu0 }
  0xc9   :  { %84 = vst.msk [vmem:[#allocation2] sm:$0xff] %vm19_vm0, %v81_v6 }
  0xca   :  { %v77_v9 = vpop.f32.mrf.mxu0 }
  0xcb   :  { %v82_v10 = vadd.f32 %v77_v9, %v23_v8 }
  0xcc   :  { %v118_v11 = vpop.f32.mrf.mxu0 }
  0xcd   :  { %85 = vst.msk [vmem:[#allocation2 + $0x8] sm:$0xff] %vm19_vm0, %v82_v10 }
  0xd0   :  { %v89_v13 = vld [vmem:[#allocation2] sm:$0xff] }
  0xd1   :  { %v98_v14 = vadd.f32 %v110_v12, %v89_v13 }
  0xd3   :  { %v100_v15 = vmax.f32 %v98_v14, 0.0 }
  0xd4   :  { %v90_v16 = vld [vmem:[#allocation2 + $0x8] sm:$0xff] }
  0xd5   :  { %102 = vst.msk [vmem:[%s168_s3] sm:$0xff] %vm19_vm0, %v100_v15  ;;  %v99_v17 = vadd.f32 %v110_v12, %v90_v16 }
  0xd7   :  { %v101_v18 = vmax.f32 %v99_v17, 0.0 }
  0xd9   :  { %103 = vst.msk [vmem:[%s168_s3 + $0x8] sm:$0xff] %vm19_vm0, %v101_v18 }

// kernel: hgt_old_forward.17
= control target key start
LH: loop header
LB: loop body
LE: loop exit
PB: predicated region body
PF: predicated region fallthrough
CT: control target
= control target key end

     0   :  { %v136_v0 = vmov 0.0   ;;  %vm137_vm0 = vmmov 0   ;;  %vm46_vm1 = vcmask 261120   ;;  %s176_s1 = inlined_call_operand.vmem [shape: bf16[32,128], index: 1, kind: input, shape index: {}]   ;;  %s177_s0 = inlined_call_operand.vmem [shape: bf16[16,32], index: 0, kind: input, shape index: {}]   ;;  %s178_s2 = inlined_call_operand.vmem [shape: f32[1,128], index: 2, kind: input, shape index: {}]   ;;  %s179_s3 = inlined_call_operand.vmem [shape: f32[16,128], index: 3, kind: output, shape index: {}]  }
   0x1   :  { %123 = vmatprep.subr.bf16.mxu0 %v136_v0  ;;  %v133_v1 = vld [vmem:[%s176_s1 + $0x8] sm:$0xff]   ;;  %127 = vmatprep.mubr.msk.bf16.mxu0 %vm137_vm0, %v136_v0  ;;  %v134_v2 = vld [vmem:[%s176_s1] sm:$0xff]  }
   0x2   :  { %124 = vmatpush3.bf16.msra.mxu0 %v133_v1  ;;  %v135_v3 = vld [vmem:[%s177_s0] sm:$0xff]  }
   0x3   :  { %125 = vmatprep.subr.bf16.mxu0 %v136_v0  ;;  %v119_v4 = vld [vmem:[%s178_s2] ss:$0 sm:$0xff] }
   0x6   :  { %126 = vmatpush3.bf16.msra.mxu0 %v134_v2 }
   0x9   :  { %128 = vmatmul.mubr.msk.bf16.vlgmr.msra.gmra.mxu0 %vm46_vm1, %v135_v3 }
  0xc9   :  { %v84_v5 = vpop.f32.mrf.mxu0 }
  0xca   :  { %v107_v6 = vadd.f32 %v119_v4, %v84_v5 }
  0xcb   :  { %v129_v7 = vpop.f32.mrf.mxu0 }
  0xcc   :  { %109 = vst [vmem:[%s179_s3] sm:$0xff] %v107_v6 }
  0xcd   :  { %v87_v8 = vpop.f32.mrf.mxu0 }
  0xce   :  { %v108_v9 = vadd.f32 %v119_v4, %v87_v8 }
  0xcf   :  { %v130_v10 = vpop.f32.mrf.mxu0 }
  0xd0   :  { %110 = vst [vmem:[%s179_s3 + $0x8] sm:$0xff] %v108_v9 }

// kernel: hgt_old_forward.21
= control target key start
LH: loop header
LB: loop body
LE: loop exit
PB: predicated region body
PF: predicated region fallthrough
CT: control target
= control target key end

     0   :  { %vm19_vm0 = vcmask 261120   ;;  %v137_v0 = vmov 0.0   ;;  %vm138_vm1 = vmmov 0   ;;  %s184_s1 = inlined_call_operand.vmem [shape: bf16[32,32], index: 1, kind: input, shape index: {}]   ;;  %s185_s0 = inlined_call_operand.vmem [shape: bf16[16,32], index: 0, kind: input, shape index: {}]   ;;  %s186_s2 = inlined_call_operand.vmem [shape: f32[1,32], index: 2, kind: input, shape index: {}]   ;;  %s187_s3 = inlined_call_operand.vmem [shape: f32[16,32], index: 3, kind: output, shape index: {}]  }
   0x1   :  { %124 = vmatprep.subr.bf16.mxu0 %v137_v0  ;;  %v134_v1 = vld [vmem:[%s184_s1 + $0x8] sm:$0xff]   ;;  %128 = vmatprep.mubr.msk.bf16.mxu0 %vm138_vm1, %v137_v0  ;;  %20 = vst.msk [vmem:[#allocation2] sm:$0xff] %vm19_vm0, %v137_v0  ;;  %21 = vst.msk [vmem:[#allocation2 + $0x8] sm:$0xff] %vm19_vm0, %v137_v0  ;;  %v135_v2 = vld [vmem:[%s184_s1] sm:$0xff]  }
   0x2   :  { %125 = vmatpush3.bf16.msra.mxu0 %v134_v1  ;;  %v136_v3 = vld [vmem:[%s185_s0] sm:$0xff]  }
   0x3   :  { %126 = vmatprep.subr.bf16.mxu0 %v137_v0  ;;  %v120_v12 = vld [vmem:[%s186_s2] ss:$0 sm:$0xff] }
   0x6   :  { %127 = vmatpush3.bf16.msra.mxu0 %v135_v2 }
   0x8   :  { %v22_v4 = vld [vmem:[#allocation2] sm:$0xff]  ;;  %v23_v8 = vld [vmem:[#allocation2 + $0x8] sm:$0xff] }
   0x9   :  { %129 = vmatmul.mubr.msk.bf16.vlgmr.msra.gmra.mxu0 %vm19_vm0, %v136_v3 }
  0xc9   :  { %v85_v5 = vpop.f32.mrf.mxu0 }
  0xca   :  { %v92_v6 = vadd.f32 %v85_v5, %v22_v4 }
  0xcb   :  { %v130_v7 = vpop.f32.mrf.mxu0 }
  0xcc   :  { %94 = vst.msk [vmem:[#allocation2] sm:$0xff] %vm19_vm0, %v92_v6 }
  0xcd   :  { %v88_v9 = vpop.f32.mrf.mxu0 }
  0xce   :  { %v93_v10 = vadd.f32 %v88_v9, %v23_v8 }
  0xcf   :  { %v131_v11 = vpop.f32.mrf.mxu0 }
  0xd0   :  { %95 = vst.msk [vmem:[#allocation2 + $0x8] sm:$0xff] %vm19_vm0, %v93_v10 }
  0xd3   :  { %v99_v13 = vld [vmem:[#allocation2] sm:$0xff] }
  0xd4   :  { %v108_v14 = vadd.f32 %v120_v12, %v99_v13 }
  0xd6   :  { %110 = vst.msk [vmem:[%s187_s3] sm:$0xff] %vm19_vm0, %v108_v14 }
  0xd7   :  { %v100_v15 = vld [vmem:[#allocation2 + $0x8] sm:$0xff] }
  0xd8   :  { %v109_v16 = vadd.f32 %v120_v12, %v100_v15 }
  0xda   :  { %111 = vst.msk [vmem:[%s187_s3 + $0x8] sm:$0xff] %vm19_vm0, %v109_v16 }

// kernel: hgt_old_forward.20
= control target key start
LH: loop header
LB: loop body
LE: loop exit
PB: predicated region body
PF: predicated region fallthrough
CT: control target
= control target key end

     0   :  { %vm37_vm0 = vcmask 261120   ;;  %v561_v0 = vmov 0.0   ;;  %vm562_vm1 = vmmov 0   ;;  %vm31_vm2 = vcmask 7168   ;;  %s692_s1 = inlined_call_operand.vmem [shape: bf16[32,48], index: 1, kind: input, shape index: {}]   ;;  %s693_s3 = inlined_call_operand.vmem [shape: s8[16,12], index: 3, kind: input, shape index: {}]   ;;  %s694_s0 = inlined_call_operand.vmem [shape: bf16[16,32], index: 0, kind: input, shape index: {}]   ;;  %s695_s5 = inlined_call_operand.vmem [shape: bf16[48,4], index: 5, kind: input, shape index: {}]   ;;  %s696_s2 = inlined_call_operand.vmem [shape: bf16[48,32], index: 2, kind: input, shape index: {}]   ;;  %s697_s4 = inlined_call_operand.vmem [shape: f32[16,1], index: 4, kind: input, shape index: {}]   ;;  %s698_s6 = inlined_call_operand.vmem [shape: f32[4,32], index: 6, kind: input, shape index: {}]   ;;  %s699_s7 = inlined_call_operand.vmem [shape: f32[16,32], index: 7, kind: output, shape index: {}]  }
   0x1   :  { %498 = vmatprep.subr.bf16.mxu0 %v561_v0  ;;  %v540_v1 = vld [vmem:[%s692_s1 + $0x8] sm:$0xff]   ;;  %502 = vmatprep.mubr.msk.bf16.mxu0 %vm562_vm1, %v561_v0  ;;  %38 = vst.msk [vmem:[#allocation4] sm:$0xff] %vm37_vm0, %v561_v0  ;;  %39 = vst.msk [vmem:[#allocation4 + $0x8] sm:$0xff] %vm37_vm0, %v561_v0  ;;  %v541_v2 = vld [vmem:[%s692_s1] sm:$0xff]   ;;  %s563_s1 = smov 12   ;;  %vm76_vm3 = vcmask 97280  }
   0x2   :  { %506 = vmatprep.subr.bf16.mxu1 %v561_v0  ;;  %512 = vmatprep.mubr.msk.bf16.mxu1 %vm562_vm1, %v561_v0  ;;  %v481_v3 = vld [vmem:[%s693_s3] sm:$0xf]   ;;  %s564_s3 = smov 24   ;;  %v566_v13 = vmov -1e+30   ;;  %vm79_vm4 = vcmask 195584  }
   0x3   :  { %499 = vmatpush3.bf16.msra.mxu0 %v540_v1  ;;  %v482_v4 = vunpack.c.0.s8 %v481_v3  ;;  %v483_v5 = vunpack.c.1.s8 %v481_v3  ;;  %v542_v6 = vld [vmem:[%s694_s0] sm:$0xff]   ;;  %s565_s0 = smov 36   ;;  %32 = vst.msk [vmem:[#allocation2] sm:$0xff] %vm31_vm2, %v566_v13  ;;  %33 = vst.msk [vmem:[#allocation2 + $0x8] sm:$0xff] %vm31_vm2, %v566_v13  ;;  %vm82_vm5 = vcmask 293888   ;;  %vm149_vm6 = vcmask 392192  }
   0x4   :  { %500 = vmatprep.subr.bf16.mxu0 %v561_v0  ;;  %v567_v34 = vmov 0   ;;  %vm34_vm7 = vcmask 31744   ;;  %v543_v44 = vld [vmem:[%s695_s5 + $0x10] sm:$0xff]   ;;  %v545_v47 = vld [vmem:[%s695_s5 + $0x8] sm:$0xff]   ;;  %v547_v49 = vld [vmem:[%s695_s5] sm:$0xff]   ;;  %vm360_vm8 = vcmask 1043456  }
   0x5   :  { %v50_v7 = vcvt.s32.f32 %v482_v4  ;;  %v51_v8 = vcvt.s32.f32 %v483_v5  ;;  %538 = vset.pattern.permute.xlu0 %v567_v34  ;;  %539 = vset.pattern.permute.xlu1 %v567_v34  ;;  %35 = vst.msk [vmem:[#allocation3] sm:$0xff] %vm34_vm7, %v561_v0  ;;  %36 = vst.msk [vmem:[#allocation3 + $0x8] sm:$0xff] %vm34_vm7, %v561_v0  ;;  %v544_v46 = vld [vmem:[%s696_s2 + $0x10] sm:$0xff]   ;;  %v546_v48 = vld [vmem:[%s696_s2 + $0x8] sm:$0xff]  }
   0x6   :  { %507 = vmatpush3.bf16.msra.mxu1 %v543_v44  ;;  %v548_v50 = vld [vmem:[%s696_s2] sm:$0xff]   ;;  %v444_v54 = vld [vmem:[%s697_s4 + $0x8] sm:$0xff] }
   0x7   :  { %501 = vmatpush3.bf16.msra.mxu0 %v541_v2  ;;  %v463_v9 = vadd.f32 -1.0, %v50_v7  ;;  %v464_v10 = vadd.f32 -1.0, %v51_v8  ;;  %508 = vmatprep.subr.bf16.mxu1 %v561_v0  ;;  %v443_v53 = vld [vmem:[%s697_s4] sm:$0xff] }
   0x8   :  { %516 = vmatprep.subr.bf16.mxu0 %v561_v0  ;;  %v268_v3 = vld [vmem:[#allocation4] sm:$0xff]  ;;  %v269_v8 = vld [vmem:[#allocation4 + $0x8] sm:$0xff] }
   0x9   :  { %v54_v11 = vmul.f32 1e+30, %v463_v9  ;;  %v55_v12 = vmul.f32 1e+30, %v464_v10 }
   0xa   :  { %503 = vmatmul.mubr.msk.bf16.vlgmr.msra.gmra.mxu0 %vm37_vm0, %v542_v6  ;;  %v147_v35 = vld [vmem:[#allocation2] sm:$0xff]  ;;  %v148_v38 = vld [vmem:[#allocation2 + $0x8] sm:$0xff]  ;;  %509 = vmatpush3.bf16.msra.mxu1 %v545_v47 }
   0xb   :  { %522 = vmatprep.mubr.msk.bf16.mxu0 %vm562_vm1, %v561_v0  ;;  %58 = vrot.lane.b32.xlu0 %v54_v11, %s563_s1 }
   0xc   :  { %64 = vrot.lane.b32.xlu1 %v54_v11, %s564_s3  ;;  %517 = vmatpush3.bf16.msra.mxu0 %v544_v46  ;;  %v181_v2 = vld [vmem:[#allocation3] sm:$0xff]  ;;  %v182_v7 = vld [vmem:[#allocation3 + $0x8] sm:$0xff] }
   0xd   :  { %518 = vmatprep.subr.bf16.mxu0 %v561_v0  ;;  %510 = vmatprep.subr.bf16.mxu1 %v561_v0 }
   0xe   :  { %511 = vmatpush3.bf16.msra.mxu1 %v547_v49 }
   0xf   :  { %60 = vrot.lane.b32.xlu0 %v55_v12, %s563_s1 }
  0x10   :  { %66 = vrot.lane.b32.xlu1 %v55_v12, %s564_s3  ;;  %519 = vmatpush3.bf16.msra.mxu0 %v546_v48 }
  0x11   :  { %520 = vmatprep.subr.bf16.mxu0 %v561_v0  ;;  %v353_v0 = vld [vmem:[%s698_s6] sm:$0xf] }
  0x12   :  { %526 = vmatprep.subr.msk.mxu1 %vm360_vm8, %v353_v0 }
  0x13   :  { %70 = vrot.lane.b32.xlu0 %v54_v11, %s565_s0 }
  0x14   :  { %72 = vrot.lane.b32.xlu1 %v55_v12, %s565_s0  ;;  %521 = vmatpush3.bf16.msra.mxu0 %v548_v50 }
  0x7d   :  { %v59_v14 = vpop.permute.xlu0 %58 }
  0x7e   :  { %v65_v15 = vpop.permute.xlu1 %64  ;;  %v77_v17 = vsel %vm76_vm3, %v54_v11, %v59_v14 }
  0x7f   :  { %v80_v19 = vsel %vm79_vm4, %v77_v17, %v65_v15 }
  0x81   :  { %v61_v16 = vpop.permute.xlu0 %60 }
  0x82   :  { %v67_v18 = vpop.permute.xlu1 %66  ;;  %v78_v21 = vsel %vm76_vm3, %v55_v12, %v61_v16 }
  0x83   :  { %v81_v24 = vsel %vm79_vm4, %v78_v21, %v67_v18 }
  0x85   :  { %v71_v20 = vpop.permute.xlu0 %70 }
  0x86   :  { %v83_v22 = vsel %vm82_vm5, %v80_v19, %v71_v20  ;;  %v73_v25 = vpop.permute.xlu1 %72 }
  0x87   :  { %v84_v29 = vsel %vm82_vm5, %v81_v24, %v73_v25 }
  0xca   :  { %v140_v23 = vpop.f32.mrf.mxu0 }
  0xcb   :  { %v141_v26 = vadd.f32 %v140_v23, %v83_v22 }
  0xcc   :  { %v504_v27 = vpop.f32.mrf.mxu0 }
  0xcd   :  { %v150_v28 = vsel %vm149_vm6, %v141_v26, -inf }
  0xce   :  { %151 = vmax.xlane.f32.xlu0 %v150_v28  ;;  %v143_v30 = vpop.f32.mrf.mxu0 }
  0xcf   :  { %v144_v31 = vadd.f32 %v143_v30, %v84_v29 }
  0xd0   :  { %v505_v32 = vpop.f32.mrf.mxu0 }
  0xd1   :  { %v153_v33 = vsel %vm149_vm6, %v144_v31, -inf }
  0xd2   :  { %154 = vmax.xlane.f32.xlu1 %v153_v33 }
 0x157   :  { %v152_v36 = vpop.xlane.xlu0 %151 }
 0x158   :  { %v156_v37 = vmax.f32 %v147_v35, %v152_v36 }
 0x15a   :  { %v158_v39 = vsub.f32 %v147_v35, %v156_v37  ;;  %342 = vst.msk [vmem:[#allocation2] sm:$0xff] %vm31_vm2, %v156_v37  ;;  %166 = vperm.xlu0 %538, %v156_v37  }
 0x15b   :  { %v155_v40 = vpop.xlane.xlu1 %154 }
 0x15c   :  { %v160_v41 = vmul.f32 1.442695, %v158_v39  ;;  %v157_v42 = vmax.f32 %v148_v38, %v155_v40 }
 0x15e   :  { %549 = vpow2.f32 %v160_v41  ;;  %v159_v43 = vsub.f32 %v148_v38, %v157_v42  ;;  %343 = vst.msk [vmem:[#allocation2 + $0x8] sm:$0xff] %vm31_vm2, %v157_v42  ;;  %171 = vperm.xlu1 %539, %v157_v42  }
 0x160   :  { %v162_v45 = vmul.f32 1.442695, %v159_v43 }
 0x162   :  { %551 = vpow2.f32 %v162_v45 }
 0x16b   :  { %v550_v51 = vpop.eup %549 }
 0x16c   :  { %185 = vperm.xlu1 %539, %v550_v51  }
 0x16f   :  { %v552_v52 = vpop.eup %551 }
 0x170   :  { %190 = vperm.xlu1 %539, %v552_v52  }
 0x174   :  { %447 = vperm.xlu1 %539, %v443_v53  }
 0x178   :  { %452 = vperm.xlu1 %539, %v444_v54  }
 0x1d5   :  { %v167_v55 = vpop.permute.xlu0 %166 }
 0x1d6   :  { %v174_v56 = vsub.f32 %v141_v26, %v167_v55 }
 0x1d8   :  { %v176_v57 = vmul.f32 1.442695, %v174_v56 }
 0x1d9   :  { %v172_v58 = vpop.permute.xlu1 %171 }
 0x1da   :  { %v175_v59 = vsub.f32 %v144_v31, %v172_v58  ;;  %553 = vpow2.f32 %v176_v57 }
 0x1dc   :  { %v178_v60 = vmul.f32 1.442695, %v175_v59 }
 0x1de   :  { %555 = vpow2.f32 %v178_v60 }
 0x1e7   :  { %v554_v61 = vpop.eup %553  ;;  %v186_v1 = vpop.permute.xlu1 %185 }
 0x1e8   :  { %v193_v4 = vmul.f32 %v186_v1, %v181_v2  ;;  %v270_v5 = vmul.f32 %v268_v3, %v186_v1 }
 0x1eb   :  { %v556_v62 = vpop.eup %555  ;;  %v191_v6 = vpop.permute.xlu1 %190 }
 0x1ec   :  { %v180_v63 = vpack.c.bf16 %v556_v62, %v554_v61  ;;  %v194_v15 = vmul.f32 %v191_v6, %v182_v7  ;;  %v271_v16 = vmul.f32 %v269_v8, %v191_v6 }
 0x1ee   :  { %513 = vmatmul.mubr.msk.bf16.vlgmr.msra.gmra.mxu1 %vm149_vm6, %v180_v63  ;;  %523 = vmatmul.mubr.msk.bf16.vlgmr.msra.gmra.mxu0 %vm149_vm6, %v180_v63 }
 0x1ef   :  { %527 = vmatpush3.msk.msra.mxu1 %vm360_vm8, %v353_v0  ;;  %v448_v29 = vpop.permute.xlu1 %447 }
 0x1f3   :  { %v453_v33 = vpop.permute.xlu1 %452 }
 0x2ae   :  { %v256_v9 = vpop.f32.mrf.mxu1  ;;  %v330_v10 = vpop.f32.mrf.mxu0 }
 0x2af   :  { %v263_v11 = vadd.f32 %v256_v9, %v193_v4  ;;  %v337_v12 = vadd.f32 %v330_v10, %v270_v5 }
 0x2b0   :  { %v514_v13 = vpop.f32.mrf.mxu1  ;;  %v524_v14 = vpop.f32.mrf.mxu0 }
 0x2b1   :  { %266 = vst.msk [vmem:[#allocation3] sm:$0xff] %vm34_vm7, %v263_v11 }
 0x2b2   :  { %339 = vst.msk [vmem:[#allocation4] sm:$0xff] %vm37_vm0, %v337_v12  ;;  %v259_v17 = vpop.f32.mrf.mxu1  ;;  %v333_v18 = vpop.f32.mrf.mxu0 }
 0x2b3   :  { %v264_v19 = vadd.f32 %v259_v17, %v194_v15  ;;  %v338_v20 = vadd.f32 %v333_v18, %v271_v16 }
 0x2b4   :  { %v515_v21 = vpop.f32.mrf.mxu1  ;;  %v525_v22 = vpop.f32.mrf.mxu0 }
 0x2b5   :  { %267 = vst.msk [vmem:[#allocation3 + $0x8] sm:$0xff] %vm34_vm7, %v264_v19 }
 0x2b6   :  { %340 = vst.msk [vmem:[#allocation4 + $0x8] sm:$0xff] %vm37_vm0, %v338_v20 }
 0x2b8   :  { %v347_v23 = vld [vmem:[#allocation3] sm:$0xff] }
 0x2b9   :  { %v349_v24 = vmax.f32 %v347_v23, 1e-30  ;;  %v439_v35 = vld [vmem:[#allocation4] sm:$0xff] }
 0x2bb   :  { %557 = vrcp.f32 %v349_v24 }
 0x2bc   :  { %v348_v25 = vld [vmem:[#allocation3 + $0x8] sm:$0xff] }
 0x2bd   :  { %v350_v26 = vmax.f32 %v348_v25, 1e-30  ;;  %v440_v31 = vld [vmem:[#allocation4 + $0x8] sm:$0xff] }
 0x2bf   :  { %559 = vrcp.f32 %v350_v26 }
 0x2c8   :  { %v558_v27 = vpop.eup %557 }
 0x2c9   :  { %528 = vmatprep.mubr.msk.f32.mxu1 %vm34_vm7, %v558_v27 }
 0x2cc   :  { %v560_v28 = vpop.eup %559 }
 0x2cd   :  { %529 = vmatmul.mubr.msk.f32.vlgmr.msra.gmra.mxu1 %vm34_vm7, %v560_v28 }
 0x38d   :  { %v530_v30 = vpop.f32.mrf.mxu1 }
 0x38e   :  { %v442_v32 = vmul.f32 %v530_v30, %v440_v31 }
 0x38f   :  { %v430_v34 = vpop.f32.mrf.mxu1 }
 0x390   :  { %v456_v36 = vmul.f32 %v453_v33, %v442_v32  ;;  %v441_v37 = vmul.f32 %v439_v35, %v430_v34 }
 0x392   :  { %458 = vst.msk [vmem:[%s699_s7 + $0x8] sm:$0xff] %vm37_vm0, %v456_v36  ;;  %v455_v38 = vmul.f32 %v448_v29, %v441_v37 }
 0x394   :  { %457 = vst.msk [vmem:[%s699_s7] sm:$0xff] %vm37_vm0, %v455_v38 }

// kernel: hgt_old_forward.22
= control target key start
LH: loop header
LB: loop body
LE: loop exit
PB: predicated region body
PF: predicated region fallthrough
CT: control target
= control target key end

     0   :  { %vm19_vm0 = vcmask 261120   ;;  %v139_v0 = vmov 0.0   ;;  %vm140_vm1 = vmmov 0   ;;  %vm21_vm2 = vcmask 257024   ;;  %s186_s1 = inlined_call_operand.vmem [shape: bf16[32,32], index: 1, kind: input, shape index: {}]   ;;  %s187_s0 = inlined_call_operand.vmem [shape: bf16[12,32], index: 0, kind: input, shape index: {}]   ;;  %s188_s2 = inlined_call_operand.vmem [shape: f32[1,32], index: 2, kind: input, shape index: {}]   ;;  %s189_s3 = inlined_call_operand.vmem [shape: f32[12,32], index: 3, kind: output, shape index: {}]  }
   0x1   :  { %126 = vmatprep.subr.bf16.mxu0 %v139_v0  ;;  %v136_v1 = vld [vmem:[%s186_s1 + $0x8] sm:$0xff]   ;;  %130 = vmatprep.mubr.msk.bf16.mxu0 %vm140_vm1, %v139_v0  ;;  %20 = vst.msk [vmem:[#allocation2] sm:$0xff] %vm19_vm0, %v139_v0  ;;  %v137_v2 = vld [vmem:[%s186_s1] sm:$0xff]  }
   0x2   :  { %127 = vmatpush3.bf16.msra.mxu0 %v136_v1  ;;  %v138_v3 = vld [vmem:[%s187_s0] sm:$0x3f]   ;;  %22 = vst.msk [vmem:[#allocation2 + $0x8] sm:$0xf] %vm21_vm2, %v139_v0 }
   0x3   :  { %128 = vmatprep.subr.bf16.mxu0 %v139_v0  ;;  %v122_v12 = vld [vmem:[%s188_s2] ss:$0 sm:$0xff] }
   0x6   :  { %129 = vmatpush3.bf16.msra.mxu0 %v137_v2 }
   0x8   :  { %v23_v4 = vld [vmem:[#allocation2] sm:$0xff] }
   0x9   :  { %131 = vmatmul.mubr.msk.bf16.vlgmr.msra.gmra.mxu0 %vm19_vm0, %v138_v3  ;;  %v24_v8 = vld [vmem:[#allocation2 + $0x8] sm:$0xf] }
  0xc9   :  { %v86_v5 = vpop.f32.mrf.mxu0 }
  0xca   :  { %v93_v6 = vadd.f32 %v86_v5, %v23_v4 }
  0xcb   :  { %v132_v7 = vpop.f32.mrf.mxu0 }
  0xcc   :  { %95 = vst.msk [vmem:[#allocation2] sm:$0xff] %vm19_vm0, %v93_v6 }
  0xcd   :  { %v89_v9 = vpop.f32.mrf.mxu0 }
  0xce   :  { %v94_v10 = vadd.f32 %v89_v9, %v24_v8 }
  0xcf   :  { %v133_v11 = vpop.f32.mrf.mxu0 }
  0xd0   :  { %97 = vst.msk [vmem:[#allocation2 + $0x8] sm:$0xf] %vm21_vm2, %v94_v10 }
  0xd3   :  { %v101_v13 = vld [vmem:[#allocation2] sm:$0xff] }
  0xd4   :  { %v110_v14 = vadd.f32 %v122_v12, %v101_v13 }
  0xd6   :  { %112 = vst.msk [vmem:[%s189_s3] sm:$0xff] %vm19_vm0, %v110_v14 }
  0xd7   :  { %v102_v15 = vld [vmem:[#allocation2 + $0x8] sm:$0xf] }
  0xd8   :  { %v111_v16 = vadd.f32 %v122_v12, %v102_v15 }
  0xda   :  { %113 = vst.msk [vmem:[%s189_s3 + $0x8] sm:$0xf] %vm21_vm2, %v111_v16 }

// kernel: hgt_old_forward.19
= control target key start
LH: loop header
LB: loop body
LE: loop exit
PB: predicated region body
PF: predicated region fallthrough
CT: control target
= control target key end

     0   :  { %vm39_vm0 = vcmask 261120   ;;  %v589_v0 = vmov 0.0   ;;  %vm590_vm1 = vmmov 0   ;;  %vm31_vm2 = vcmask 7168   ;;  %s740_s1 = inlined_call_operand.vmem [shape: bf16[32,64], index: 1, kind: input, shape index: {}]   ;;  %s741_s3 = inlined_call_operand.vmem [shape: s8[12,16], index: 3, kind: input, shape index: {}]   ;;  %s742_s0 = inlined_call_operand.vmem [shape: bf16[12,32], index: 0, kind: input, shape index: {}]   ;;  %s743_s5 = inlined_call_operand.vmem [shape: bf16[64,4], index: 5, kind: input, shape index: {}]   ;;  %s744_s2 = inlined_call_operand.vmem [shape: bf16[64,32], index: 2, kind: input, shape index: {}]   ;;  %s745_s4 = inlined_call_operand.vmem [shape: f32[12,1], index: 4, kind: input, shape index: {}]   ;;  %s746_s6 = inlined_call_operand.vmem [shape: f32[4,32], index: 6, kind: input, shape index: {}]   ;;  %s747_s7 = inlined_call_operand.vmem [shape: f32[12,32], index: 7, kind: output, shape index: {}]  }
   0x1   :  { %520 = vmatprep.subr.bf16.mxu0 %v589_v0  ;;  %v566_v1 = vld [vmem:[%s740_s1 + $0x8] sm:$0xff]   ;;  %524 = vmatprep.mubr.msk.bf16.mxu0 %vm590_vm1, %v589_v0  ;;  %40 = vst.msk [vmem:[#allocation4] sm:$0xff] %vm39_vm0, %v589_v0  ;;  %v567_v2 = vld [vmem:[%s740_s1] sm:$0xff]   ;;  %s591_s1 = smov 16   ;;  %v594_v14 = vmov -1e+30  }
   0x2   :  { %528 = vmatprep.subr.bf16.mxu1 %v589_v0  ;;  %536 = vmatprep.mubr.msk.bf16.mxu1 %vm590_vm1, %v589_v0  ;;  %v49_v3 = vld [vmem:[%s741_s3] sm:$0x3]  ;;  %v50_v4 = vld [vmem:[%s741_s3 + $0x2] sm:$0x1]  ;;  %s592_s3 = smov 32   ;;  %32 = vst.msk [vmem:[#allocation2] sm:$0xff] %vm31_vm2, %v594_v14 }
   0x3   :  { %521 = vmatpush3.bf16.msra.mxu0 %v566_v1  ;;  %v51_v5 = vunpack.c.0.s8 %v49_v3  ;;  %v52_v6 = vunpack.c.0.s8 %v50_v4  ;;  %v568_v7 = vld [vmem:[%s742_s0] sm:$0x3f]   ;;  %s593_s0 = smov 48   ;;  %vm79_vm3 = vcmask 130048   ;;  %vm85_vm4 = vcmask 392192   ;;  %v569_v44 = vld [vmem:[%s743_s5 + $0x18] sm:$0xff]  }
   0x4   :  { %522 = vmatprep.subr.bf16.mxu0 %v589_v0  ;;  %vm151_vm5 = vcmask 523264   ;;  %vm155_vm6 = vcmask 519168   ;;  %vm33_vm7 = vcmask 3072   ;;  %v595_v35 = vmov 0   ;;  %v570_v46 = vld [vmem:[%s744_s2 + $0x18] sm:$0xff]   ;;  %529 = vmatpush3.bf16.msra.mxu1 %v569_v44  ;;  %v571_v47 = vld [vmem:[%s743_s5 + $0x10] sm:$0xff]  }
   0x5   :  { %v53_v8 = vcvt.s32.f32 %v51_v5  ;;  %v54_v9 = vcvt.s32.f32 %v52_v6  ;;  %34 = vst.msk [vmem:[#allocation2 + $0x8] sm:$0xf] %vm33_vm7, %v594_v14  ;;  %564 = vset.pattern.permute.xlu0 %v595_v35  ;;  %565 = vset.pattern.permute.xlu1 %v595_v35  ;;  %vm35_vm8 = vcmask 31744   ;;  %v572_v49 = vld [vmem:[%s744_s2 + $0x10] sm:$0xff]   ;;  %v573_v50 = vld [vmem:[%s743_s5 + $0x8] sm:$0xff]   ;;  %vm37_vm9 = vcmask 27648  }
   0x6   :  { %36 = vst.msk [vmem:[#allocation3] sm:$0xff] %vm35_vm8, %v589_v0  ;;  %530 = vmatprep.subr.bf16.mxu1 %v589_v0  ;;  %v574_v51 = vld [vmem:[%s744_s2 + $0x8] sm:$0xff]   ;;  %vm41_vm10 = vcmask 257024   ;;  %v575_v52 = vld [vmem:[%s743_s5] sm:$0xff]   ;;  %vm382_vm11 = vcmask 1043456  }
   0x7   :  { %523 = vmatpush3.bf16.msra.mxu0 %v567_v2  ;;  %v485_v10 = vadd.f32 -1.0, %v53_v8  ;;  %v486_v11 = vadd.f32 -1.0, %v54_v9  ;;  %38 = vst.msk [vmem:[#allocation3 + $0x8] sm:$0xf] %vm37_vm9, %v589_v0  ;;  %v576_v53 = vld [vmem:[%s744_s2] sm:$0xff]  }
   0x8   :  { %540 = vmatprep.subr.bf16.mxu0 %v589_v0  ;;  %531 = vmatpush3.bf16.msra.mxu1 %v571_v47  ;;  %42 = vst.msk [vmem:[#allocation4 + $0x8] sm:$0xf] %vm41_vm10, %v589_v0  ;;  %v465_v56 = vld [vmem:[%s745_s4] sm:$0xff]  ;;  %v466_v57 = vld [vmem:[%s745_s4 + $0x8] sm:$0xf] }
   0x9   :  { %v57_v12 = vmul.f32 1e+30, %v485_v10  ;;  %v58_v13 = vmul.f32 1e+30, %v486_v11  ;;  %v149_v36 = vld [vmem:[#allocation2] sm:$0xff]  ;;  %532 = vmatprep.subr.bf16.mxu1 %v589_v0 }
   0xa   :  { %525 = vmatmul.mubr.msk.bf16.vlgmr.msra.gmra.mxu0 %vm39_vm0, %v568_v7  ;;  %v375_v3 = vld [vmem:[%s746_s6] sm:$0xf] }
   0xb   :  { %548 = vmatprep.mubr.msk.bf16.mxu0 %vm590_vm1, %v589_v0  ;;  %61 = vrot.lane.b32.xlu0 %v57_v12, %s591_s1  ;;  %v280_v6 = vld [vmem:[#allocation4] sm:$0xff] }
   0xc   :  { %67 = vrot.lane.b32.xlu1 %v57_v12, %s592_s3  ;;  %v150_v39 = vld [vmem:[#allocation2 + $0x8] sm:$0xf]  ;;  %541 = vmatpush3.bf16.msra.mxu0 %v570_v46 }
   0xd   :  { %542 = vmatprep.subr.bf16.mxu0 %v589_v0  ;;  %533 = vmatpush3.bf16.msra.mxu1 %v573_v50  ;;  %v184_v5 = vld [vmem:[#allocation3] sm:$0xff] }
   0xe   :  { %534 = vmatprep.subr.bf16.mxu1 %v589_v0  ;;  %v185_v10 = vld [vmem:[#allocation3 + $0x8] sm:$0xf] }
   0xf   :  { %63 = vrot.lane.b32.xlu0 %v58_v13, %s591_s1  ;;  %v281_v11 = vld [vmem:[#allocation4 + $0x8] sm:$0xf] }
  0x10   :  { %69 = vrot.lane.b32.xlu1 %v58_v13, %s592_s3  ;;  %543 = vmatpush3.bf16.msra.mxu0 %v572_v49 }
  0x11   :  { %544 = vmatprep.subr.bf16.mxu0 %v589_v0  ;;  %535 = vmatpush3.bf16.msra.mxu1 %v575_v52 }
  0x12   :  { %552 = vmatprep.subr.msk.mxu1 %vm382_vm11, %v375_v3 }
  0x13   :  { %73 = vrot.lane.b32.xlu0 %v57_v12, %s593_s0 }
  0x14   :  { %75 = vrot.lane.b32.xlu1 %v58_v13, %s593_s0  ;;  %545 = vmatpush3.bf16.msra.mxu0 %v574_v51 }
  0x15   :  { %546 = vmatprep.subr.bf16.mxu0 %v589_v0 }
  0x18   :  { %547 = vmatpush3.bf16.msra.mxu0 %v576_v53 }
  0x7d   :  { %v62_v15 = vpop.permute.xlu0 %61 }
  0x7e   :  { %v68_v16 = vpop.permute.xlu1 %67  ;;  %v80_v18 = vsel %vm79_vm3, %v57_v12, %v62_v15 }
  0x7f   :  { %v83_v20 = vsel %vm39_vm0, %v80_v18, %v68_v16 }
  0x81   :  { %v64_v17 = vpop.permute.xlu0 %63 }
  0x82   :  { %v70_v19 = vpop.permute.xlu1 %69  ;;  %v81_v22 = vsel %vm79_vm3, %v58_v13, %v64_v17 }
  0x83   :  { %v84_v25 = vsel %vm39_vm0, %v81_v22, %v70_v19 }
  0x85   :  { %v74_v21 = vpop.permute.xlu0 %73 }
  0x86   :  { %v86_v23 = vsel %vm85_vm4, %v83_v20, %v74_v21  ;;  %v76_v26 = vpop.permute.xlu1 %75 }
  0x87   :  { %v87_v30 = vsel %vm85_vm4, %v84_v25, %v76_v26 }
  0xca   :  { %v142_v24 = vpop.f32.mrf.mxu0 }
  0xcb   :  { %v667_v27 = vadd.f32 %v142_v24, %v86_v23 }
  0xcc   :  { %v526_v28 = vpop.f32.mrf.mxu0 }
  0xcd   :  { %v152_v29 = vsel %vm151_vm5, %v667_v27, -inf }
  0xce   :  { %153 = vmax.xlane.f32.xlu0 %v152_v29  ;;  %v145_v31 = vpop.f32.mrf.mxu0 }
  0xcf   :  { %v671_v32 = vadd.f32 %v145_v31, %v87_v30 }
  0xd0   :  { %v527_v33 = vpop.f32.mrf.mxu0 }
  0xd1   :  { %v156_v34 = vsel %vm155_vm6, %v671_v32, -inf }
  0xd2   :  { %157 = vmax.xlane.f32.xlu1 %v156_v34 }
 0x157   :  { %v154_v37 = vpop.xlane.xlu0 %153 }
 0x158   :  { %v159_v38 = vmax.f32 %v149_v36, %v154_v37 }
 0x15a   :  { %v161_v40 = vsub.f32 %v149_v36, %v159_v38  ;;  %363 = vst.msk [vmem:[#allocation2] sm:$0xff] %vm31_vm2, %v159_v38  ;;  %169 = vperm.xlu0 %564, %v159_v38  }
 0x15b   :  { %v158_v41 = vpop.xlane.xlu1 %157 }
 0x15c   :  { %v163_v42 = vmul.f32 1.442695, %v161_v40  ;;  %v160_v43 = vmax.f32 %v150_v39, %v158_v41 }
 0x15e   :  { %577 = vpow2.f32 %v163_v42  ;;  %v162_v45 = vsub.f32 %v150_v39, %v160_v43  ;;  %365 = vst.msk [vmem:[#allocation2 + $0x8] sm:$0xf] %vm33_vm7, %v160_v43  ;;  %174 = vperm.xlu1 %565, %v160_v43  }
 0x160   :  { %v165_v48 = vmul.f32 1.442695, %v162_v45 }
 0x162   :  { %579 = vpow2.f32 %v165_v48 }
 0x16b   :  { %v578_v54 = vpop.eup %577 }
 0x16c   :  { %188 = vperm.xlu1 %565, %v578_v54  }
 0x16f   :  { %v580_v55 = vpop.eup %579 }
 0x170   :  { %193 = vperm.xlu1 %565, %v580_v55  }
 0x174   :  { %469 = vperm.xlu1 %565, %v465_v56  }
 0x178   :  { %474 = vperm.xlu1 %565, %v466_v57  }
 0x1d5   :  { %v170_v58 = vpop.permute.xlu0 %169 }
 0x1d6   :  { %v177_v59 = vsub.f32 %v667_v27, %v170_v58 }
 0x1d8   :  { %v179_v60 = vmul.f32 1.442695, %v177_v59 }
 0x1d9   :  { %v175_v61 = vpop.permute.xlu1 %174 }
 0x1da   :  { %v178_v62 = vsub.f32 %v671_v32, %v175_v61  ;;  %581 = vpow2.f32 %v179_v60 }
 0x1dc   :  { %v181_v63 = vmul.f32 1.442695, %v178_v62 }
 0x1de   :  { %583 = vpow2.f32 %v181_v63 }
 0x1e7   :  { %v582_v0 = vpop.eup %581  ;;  %v189_v4 = vpop.permute.xlu1 %188 }
 0x1e8   :  { %v196_v7 = vmul.f32 %v189_v4, %v184_v5  ;;  %v282_v8 = vmul.f32 %v280_v6, %v189_v4 }
 0x1eb   :  { %v584_v1 = vpop.eup %583  ;;  %v194_v9 = vpop.permute.xlu1 %193 }
 0x1ec   :  { %v183_v2 = vpack.c.bf16 %v584_v1, %v582_v0  ;;  %v197_v18 = vmul.f32 %v194_v9, %v185_v10  ;;  %v283_v19 = vmul.f32 %v281_v11, %v194_v9 }
 0x1ee   :  { %537 = vmatmul.mubr.msk.bf16.vlgmr.msra.gmra.mxu1 %vm151_vm5, %v183_v2  ;;  %549 = vmatmul.mubr.msk.bf16.vlgmr.msra.gmra.mxu0 %vm151_vm5, %v183_v2 }
 0x1ef   :  { %553 = vmatpush3.msk.msra.mxu1 %vm382_vm11, %v375_v3  ;;  %v470_v32 = vpop.permute.xlu1 %469 }
 0x1f3   :  { %v475_v36 = vpop.permute.xlu1 %474 }
 0x2ae   :  { %v267_v12 = vpop.f32.mrf.mxu1  ;;  %v350_v13 = vpop.f32.mrf.mxu0 }
 0x2af   :  { %v274_v14 = vadd.f32 %v267_v12, %v196_v7  ;;  %v357_v15 = vadd.f32 %v350_v13, %v282_v8 }
 0x2b0   :  { %v538_v16 = vpop.f32.mrf.mxu1  ;;  %v550_v17 = vpop.f32.mrf.mxu0 }
 0x2b1   :  { %277 = vst.msk [vmem:[#allocation3] sm:$0xff] %vm35_vm8, %v274_v14 }
 0x2b2   :  { %359 = vst.msk [vmem:[#allocation4] sm:$0xff] %vm39_vm0, %v357_v15  ;;  %v270_v20 = vpop.f32.mrf.mxu1  ;;  %v353_v21 = vpop.f32.mrf.mxu0 }
 0x2b3   :  { %v275_v22 = vadd.f32 %v270_v20, %v197_v18  ;;  %v358_v23 = vadd.f32 %v353_v21, %v283_v19 }
 0x2b4   :  { %v539_v24 = vpop.f32.mrf.mxu1  ;;  %v551_v25 = vpop.f32.mrf.mxu0 }
 0x2b5   :  { %279 = vst.msk [vmem:[#allocation3 + $0x8] sm:$0xf] %vm37_vm9, %v275_v22 }
 0x2b6   :  { %361 = vst.msk [vmem:[#allocation4 + $0x8] sm:$0xf] %vm41_vm10, %v358_v23 }
 0x2b8   :  { %v369_v26 = vld [vmem:[#allocation3] sm:$0xff] }
 0x2b9   :  { %v371_v27 = vmax.f32 %v369_v26, 1e-30  ;;  %v461_v38 = vld [vmem:[#allocation4] sm:$0xff] }
 0x2bb   :  { %585 = vrcp.f32 %v371_v27 }
 0x2bc   :  { %v370_v28 = vld [vmem:[#allocation3 + $0x8] sm:$0xf] }
 0x2bd   :  { %v372_v29 = vmax.f32 %v370_v28, 1e-30  ;;  %v462_v34 = vld [vmem:[#allocation4 + $0x8] sm:$0xf] }
 0x2bf   :  { %587 = vrcp.f32 %v372_v29 }
 0x2c8   :  { %v586_v30 = vpop.eup %585 }
 0x2c9   :  { %554 = vmatprep.mubr.msk.f32.mxu1 %vm35_vm8, %v586_v30 }
 0x2cc   :  { %v588_v31 = vpop.eup %587 }
 0x2cd   :  { %555 = vmatmul.mubr.msk.f32.vlgmr.msra.gmra.mxu1 %vm35_vm8, %v588_v31 }
 0x38d   :  { %v556_v33 = vpop.f32.mrf.mxu1 }
 0x38e   :  { %v464_v35 = vmul.f32 %v556_v33, %v462_v34 }
 0x38f   :  { %v452_v37 = vpop.f32.mrf.mxu1 }
 0x390   :  { %v478_v39 = vmul.f32 %v475_v36, %v464_v35  ;;  %v463_v40 = vmul.f32 %v461_v38, %v452_v37 }
 0x392   :  { %480 = vst.msk [vmem:[%s747_s7 + $0x8] sm:$0xf] %vm41_vm10, %v478_v39  ;;  %v477_v41 = vmul.f32 %v470_v32, %v463_v40 }
 0x394   :  { %479 = vst.msk [vmem:[%s747_s7] sm:$0xff] %vm39_vm0, %v477_v41 }

// kernel: hgt_old_forward.29
= control target key start
LH: loop header
LB: loop body
LE: loop exit
PB: predicated region body
PF: predicated region fallthrough
CT: control target
= control target key end

     0   :  { %vm36_vm0 = vcmask 80896   ;;  %s172_s0 = inlined_call_operand.vmem [shape: f32[64,10], index: 0, kind: input, shape index: {}]   ;;  %s173_s1 = inlined_call_operand.vmem [shape: f32[64,10], index: 1, kind: input, shape index: {}]   ;;  %s174_s2 = inlined_call_operand.hbm [shape: f32[1,10], index: 2, kind: output, shape index: {}]  }
   0x1   :  { %v12_v0 = vld [vmem:[%s172_s0] sm:$0xff]  ;;  %v13_v1 = vld [vmem:[%s172_s0 + $0x8] sm:$0xff]  ;;  %v14_v2 = vld [vmem:[%s172_s0 + $0x10] sm:$0xff] }
   0x2   :  { %v15_v3 = vld [vmem:[%s172_s0 + $0x18] sm:$0xff]  ;;  %v16_v4 = vld [vmem:[%s172_s0 + $0x20] sm:$0xff]  ;;  %v21_v6 = vld [vmem:[%s173_s1 + $0x8] sm:$0xff] }
   0x3   :  { %v20_v5 = vld [vmem:[%s173_s1] sm:$0xff]  ;;  %v22_v7 = vld [vmem:[%s173_s1 + $0x10] sm:$0xff]  ;;  %v23_v8 = vld [vmem:[%s173_s1 + $0x18] sm:$0xff]  ;;  %v29_v11 = vmul.f32 %v21_v6, %v13_v1 }
   0x4   :  { %v28_v9 = vmul.f32 %v20_v5, %v12_v0  ;;  %v24_v10 = vld [vmem:[%s173_s1 + $0x20] sm:$0xff]  ;;  %v30_v12 = vmul.f32 %v22_v7, %v14_v2  ;;  %v31_v13 = vmul.f32 %v23_v8, %v15_v3  ;;  %v17_v14 = vld [vmem:[%s172_s0 + $0x28] sm:$0xff] }
   0x5   :  { %v25_v15 = vld [vmem:[%s173_s1 + $0x28] sm:$0xff] }
   0x6   :  { %v37_v16 = vsel %vm36_vm0, %v28_v9, 0.0 }
   0x7   :  { %7 = vsyncpa [#allocation3], 0  ;;  %v32_v17 = vmul.f32 %v24_v10, %v16_v4  ;;  %v38_v18 = vsel %vm36_vm0, %v29_v11, 0.0  ;;  %v40_v19 = vsel %vm36_vm0, %v30_v12, 0.0  ;;  %v18_v20 = vld [vmem:[%s172_s0 + $0x30] sm:$0xff]  ;;  %v33_v23 = vmul.f32 %v25_v15, %v17_v14  ;;  %v19_v25 = vld [vmem:[%s172_s0 + $0x38] sm:$0xff] }
   0x8   :  { %v26_v21 = vld [vmem:[%s173_s1 + $0x30] sm:$0xff]  ;;  %v39_v22 = vadd.f32 %v38_v18, %v37_v16  ;;  %v42_v24 = vsel %vm36_vm0, %v31_v13, 0.0  ;;  %v27_v26 = vld [vmem:[%s173_s1 + $0x38] sm:$0xff]  ;;  %s97_s0 = smov [#allocation2]   ;;  %vm58_vm1 = vcmask 73728  }
   0x9   :  { %v34_v28 = vmul.f32 %v26_v21, %v18_v20  ;;  %v44_v29 = vsel %vm36_vm0, %v32_v17, 0.0  ;;  %v35_v31 = vmul.f32 %v27_v26, %v19_v25  ;;  %v46_v32 = vsel %vm36_vm0, %v33_v23, 0.0  ;;  %s66_s1 = sshll.u32 %s97_s0, 4  ;;  %s67_s1 = int_to_ptr.vmem [resolvable:$true] %s66_s1 }
   0xa   :  { %v41_v27 = vadd.f32 %v40_v19, %v39_v22  ;;  %s75_s13 = scalar_lea.vmem %s67_s1, 16  ;;  %s79_s14 = scalar_lea.vmem %s67_s1, 32 }
   0xb   :  { %v48_v34 = vsel %vm36_vm0, %v34_v28, 0.0  ;;  %v50_v36 = vsel %vm36_vm0, %v35_v31, 0.0  ;;  %p76_p0 = scmp.ne.s32.totalorder %s67_s1, %s75_s13  ;;  %p80_p1 = scmp.lt.s32.totalorder %s67_s1, %s67_s1 }
   0xc   :  { %v43_v30 = vadd.f32 %v42_v24, %v41_v27  ;;  %p81_p2 = scmp.lt.s32.totalorder %s79_s14, %s75_s13 }
   0xe   :  { %v45_v33 = vadd.f32 %v44_v29, %v43_v30  ;;  %p82_p3 = por %p81_p2, %p80_p1 }
  0x10   :  { %v47_v35 = vadd.f32 %v46_v32, %v45_v33  ;;  %p83_p4 = pnand %p82_p3, %p76_p0 }
  0x12   :  { %v49_v37 = vadd.f32 %v48_v34, %v47_v35 }
  0x14   :  { %v51_v38 = vadd.f32 %v50_v36, %v49_v37 }
  0x16   :  { %v52_v39 = vrot.slane %v51_v38, 4 }
  0x18   :  { %v53_v40 = vadd.f32 %v52_v39, %v51_v38 }
  0x1a   :  { %v54_v41 = vrot.slane %v53_v40, 2 }
  0x1c   :  { %v55_v42 = vadd.f32 %v54_v41, %v53_v40 }
  0x1e   :  { %v56_v43 = vrot.slane %v55_v42, 1 }
  0x20   :  { %v57_v44 = vadd.f32 %v56_v43, %v55_v42 }
  0x22   :  { %59 = vst.msk [vmem:[#allocation2] sm:$0x1] %vm58_vm1, %v57_v44 }
  0x23   :  { %86 = shalt.err (!%p83_p4)
}
  0x24   :  { %69 = dma.vmem_to_hbm [thread:$0]  %s67_s1, 16, %s174_s2, [#allocation3]  }
  0x25   :  { %95 = dma.done.wait [#allocation3], 16  }
  0x26   :  { %96 = vsyncadd [#allocation3], 4294967280 }
  0x27   :  { %73 = vsyncpa [#allocation3], 1 }

</bundles_post_ra>
